<compile_context>
chip_gen: v6e
topology: v6e:2x2x1
jax: 0.10.0
libtpu: 0.0.40
codegen_flags: <defaults>
</compile_context>

<pallas_src>
import functools

import jax
import jax.numpy as jnp
from jax.experimental import pallas as pl
from jax.experimental.pallas import tpu as pltpu

EPS = 1e-5
LANE = 128


def _chip_defaults():
    """Generation-gated tiling: v5e/v6e have 128 MiB physical VMEM, v7x only 64 MiB."""
    try:
        vmem_bytes = pltpu.get_tpu_info().vmem_capacity_bytes
    except Exception:
        vmem_bytes = 64 * 1024 * 1024
    if vmem_bytes >= 128 * 1024 * 1024:          # v5e / v6e
        return 1024, 96 * 1024 * 1024
    return 512, 32 * 1024 * 1024                 # v7x or unknown: conservative


TILE_M_TARGET, VMEM_LIMIT = _chip_defaults()


def _round_up(x, m):
    return (x + m - 1) // m * m


def _pad2(a, rows, cols):
    return jnp.pad(a, ((0, rows - a.shape[0]), (0, cols - a.shape[1])))


# ----------------------------- Pallas kernels ------------------------------
# Pass 1: conv-as-matmul (bf16 output) + per-split per-channel sum / sum-of-squares.

def _matmul_stats_kernel(p_ref, w_ref, y_ref, sum_ref, ssq_ref):
    @pl.when(pl.program_id(1) == 0)
    def _():
        sum_ref[...] = jnp.zeros_like(sum_ref)
        ssq_ref[...] = jnp.zeros_like(ssq_ref)

    y = jnp.dot(p_ref[...], w_ref[...], preferred_element_type=jnp.float32)
    y_ref[...] = y.astype(y_ref.dtype)                       # bf16 store (halves HBM)
    sum_ref[0:1, :] += jnp.sum(y, axis=0, keepdims=True)     # stats from f32 value
    ssq_ref[0:1, :] += jnp.sum(y * y, axis=0, keepdims=True)


def _matmul_stats_fused_kernel(p_ref, w_ref, ps_ref, ws_ref,
                               y_ref, ys_ref, sum_ref, ssq_ref, sums_ref, ssqs_ref):
    """3x3 conv matmul fused with the 1x1 projection-shortcut matmul on the same M tile."""
    @pl.when(pl.program_id(1) == 0)
    def _():
        for r in (sum_ref, ssq_ref, sums_ref, ssqs_ref):
            r[...] = jnp.zeros_like(r)

    y = jnp.dot(p_ref[...], w_ref[...], preferred_element_type=jnp.float32)
    ys = jnp.dot(ps_ref[...], ws_ref[...], preferred_element_type=jnp.float32)
    y_ref[...] = y.astype(y_ref.dtype)
    ys_ref[...] = ys.astype(ys_ref.dtype)
    sum_ref[0:1, :] += jnp.sum(y, axis=0, keepdims=True)
    ssq_ref[0:1, :] += jnp.sum(y * y, axis=0, keepdims=True)
    sums_ref[0:1, :] += jnp.sum(ys, axis=0, keepdims=True)
    ssqs_ref[0:1, :] += jnp.sum(ys * ys, axis=0, keepdims=True)


# Pass 2: apply precomputed per-channel scale/shift (+ residual variants) (+ ReLU).
# scale/shift are concatenated into one (2,N) / (4,N) operand.

def _bn_act_kernel(y_ref, ss_ref, o_ref, *, relu):
    ss = ss_ref[...]
    out = y_ref[...].astype(jnp.float32) * ss[0:1, :] + ss[1:2, :]
    if relu:
        out = jnp.maximum(out, 0.0)
    o_ref[...] = out.astype(o_ref.dtype)


def _bn_add_res_kernel(y_ref, ss_ref, r_ref, o_ref, *, relu):
    ss = ss_ref[...]
    out = (y_ref[...].astype(jnp.float32) * ss[0:1, :] + ss[1:2, :]
           + r_ref[...].astype(jnp.float32))
    if relu:
        out = jnp.maximum(out, 0.0)
    o_ref[...] = out.astype(o_ref.dtype)


def _bn_add_bn_kernel(y_ref, ss_ref, ys_ref, o_ref, *, relu):
    ss = ss_ref[...]
    out = (y_ref[...].astype(jnp.float32) * ss[0:1, :] + ss[1:2, :]
           + ys_ref[...].astype(jnp.float32) * ss[2:3, :] + ss[3:4, :])
    if relu:
        out = jnp.maximum(out, 0.0)
    o_ref[...] = out.astype(o_ref.dtype)


# ------------------------------ pallas_call wrappers ------------------------

def _matmul_stats_call(patches, w_mat, tile_m, n_splits):
    Mp, Kp = patches.shape
    Np = w_mat.shape[1]
    tiles = Mp // tile_m
    assert Mp % tile_m == 0 and tiles % n_splits == 0
    per = tiles // n_splits
    vec = pl.BlockSpec((8, Np), lambda c, i: (c, 0))          # per-split partial stats
    return pl.pallas_call(
        _matmul_stats_kernel,
        out_shape=(jax.ShapeDtypeStruct((Mp, Np), jnp.bfloat16),
                   jax.ShapeDtypeStruct((n_splits * 8, Np), jnp.float32),
                   jax.ShapeDtypeStruct((n_splits * 8, Np), jnp.float32)),
        grid=(n_splits, per),
        in_specs=[pl.BlockSpec((tile_m, Kp), lambda c, i: (c * per + i, 0)),
                  pl.BlockSpec((Kp, Np), lambda c, i: (0, 0))],
        out_specs=(pl.BlockSpec((tile_m, Np), lambda c, i: (c * per + i, 0)), vec, vec),
        compiler_params=pltpu.CompilerParams(
            dimension_semantics=("parallel", "arbitrary"),    # split M tiles across cores
            vmem_limit_bytes=VMEM_LIMIT),
    )(patches, w_mat)


def _matmul_stats_fused_call(p2, w2, ps, ws, tile_m, n_splits):
    Mp, K2 = p2.shape
    Ks = ps.shape[1]
    Np = w2.shape[1]
    tiles = Mp // tile_m
    assert Mp % tile_m == 0 and tiles % n_splits == 0
    per = tiles // n_splits
    vec = pl.BlockSpec((8, Np), lambda c, i: (c, 0))
    tile = pl.BlockSpec((tile_m, Np), lambda c, i: (c * per + i, 0))
    return pl.pallas_call(
        _matmul_stats_fused_kernel,
        out_shape=(jax.ShapeDtypeStruct((Mp, Np), jnp.bfloat16),
                   jax.ShapeDtypeStruct((Mp, Np), jnp.bfloat16),
                   jax.ShapeDtypeStruct((n_splits * 8, Np), jnp.float32),
                   jax.ShapeDtypeStruct((n_splits * 8, Np), jnp.float32),
                   jax.ShapeDtypeStruct((n_splits * 8, Np), jnp.float32),
                   jax.ShapeDtypeStruct((n_splits * 8, Np), jnp.float32)),
        grid=(n_splits, per),
        in_specs=[pl.BlockSpec((tile_m, K2), lambda c, i: (c * per + i, 0)),
                  pl.BlockSpec((K2, Np), lambda c, i: (0, 0)),
                  pl.BlockSpec((tile_m, Ks), lambda c, i: (c * per + i, 0)),
                  pl.BlockSpec((Ks, Np), lambda c, i: (0, 0))],
        out_specs=(tile, tile, vec, vec, vec, vec),
        compiler_params=pltpu.CompilerParams(
            dimension_semantics=("parallel", "arbitrary"),
            vmem_limit_bytes=VMEM_LIMIT),
    )(p2, w2, ps, ws)


def _apply_call(kernel, args, tile_m, out_dtype, relu):
    Mp, Np = args[0].shape
    assert Mp % tile_m == 0
    in_specs = []
    for a in args:
        if a.shape[0] == Mp:      # M-tiled tensors
            in_specs.append(pl.BlockSpec((tile_m, Np), lambda i: (i, 0)))
        else:                     # per-channel scale/shift rows (broadcast)
            in_specs.append(pl.BlockSpec((a.shape[0], Np), lambda i: (0, 0)))
    return pl.pallas_call(
        functools.partial(kernel, relu=relu),
        out_shape=jax.ShapeDtypeStruct((Mp, Np), out_dtype),
        grid=(Mp // tile_m,),
        in_specs=in_specs,
        out_specs=pl.BlockSpec((tile_m, Np), lambda i: (i, 0)),
        compiler_params=pltpu.CompilerParams(
            dimension_semantics=("parallel",),               # independent M tiles -> megacore
            vmem_limit_bytes=VMEM_LIMIT),
    )(*args)


# ------------------------------ JAX glue ------------------------------------

def _im2col_3x3(x_nhwc, stride):
    """3x3, padding=1 im2col (bf16).  Returns ((M, 9*C) patches, (B, Ho, Wo))."""
    B, H, W, C = x_nhwc.shape
    Ho = (H + 2 - 3) // stride + 1
    Wo = (W + 2 - 3) // stride + 1
    xp = jnp.pad(x_nhwc, ((0, 0), (1, 1), (1, 1), (0, 0)))
    cols = [xp[:, kh:kh + (Ho - 1) * stride + 1:stride,
               kw:kw + (Wo - 1) * stride + 1:stride, :]
            for kh in range(3) for kw in range(3)]
    patches = jnp.concatenate(cols, axis=-1)             # (B, Ho, Wo, 9*C)
    return patches.reshape(B * Ho * Wo, 9 * C), (B, Ho, Wo)


def _w3x3_to_mat(w):
    # PyTorch OIHW (Cout, Cin, 3, 3) -> (kh*kw*Cin, Cout), matching im2col tap order.
    return jnp.transpose(w, (2, 3, 1, 0)).reshape(-1, w.shape[0])


def _bn_scale_shift(s_part, ssq_part, gamma, beta, m_true, n_pad, eps=EPS):
    """Concatenated (2, N) [scale; shift] from per-split partial sum / sum-sq slabs."""
    s = jnp.sum(s_part, axis=0, keepdims=True)
    ss = jnp.sum(ssq_part, axis=0, keepdims=True)
    g = jnp.pad(gamma.astype(jnp.float32), (0, n_pad - gamma.shape[0])).reshape(1, n_pad)
    b = jnp.pad(beta.astype(jnp.float32), (0, n_pad - beta.shape[0])).reshape(1, n_pad)
    mean = s / m_true
    var = jnp.maximum(ss / m_true - mean * mean, 0.0)    # biased variance (PyTorch BN fwd)
    scale = g * jax.lax.rsqrt(var + eps)
    shift = b - mean * scale
    return jnp.concatenate([scale, shift], axis=0)       # (2, n_pad)


def basic_block(x_nhwc, p, in_planes, planes, stride, final_relu, out_dtype):
    """One BasicBlock: conv3x3/BN/ReLU -> conv3x3/BN (+ shortcut) (+ ReLU)."""
    x_bf16 = x_nhwc.astype(jnp.bfloat16)

    # ---- block_layer1: conv3x3(stride) -> BN -> ReLU -------------------------
    p1, (B, Ho, Wo) = _im2col_3x3(x_bf16, stride)
    M = B * Ho * Wo
    tile_m = min(TILE_M_TARGET, _round_up(M, 8))
    n_splits = 2 if _round_up(M, tile_m) // tile_m >= 2 else 1   # megacore pass-1 split
    M_pad = _round_up(M, n_splits * tile_m)
    N_pad = _round_up(planes, LANE)

    K1_pad = _round_up(p1.shape[1], LANE)
    p1p = _pad2(p1, M_pad, K1_pad)
    w1 = _pad2(_w3x3_to_mat(p["w1"]).astype(jnp.bfloat16), K1_pad, N_pad)

    y1, s1, q1 = _matmul_stats_call(p1p, w1, tile_m, n_splits)
    ss1 = _bn_scale_shift(s1, q1, p["g1"], p["b1"], M, N_pad)
    a1 = _apply_call(_bn_act_kernel, (y1, ss1), tile_m, jnp.bfloat16, relu=True)
    a1_nhwc = a1[:M, :planes].reshape(B, Ho, Wo, planes)

    # ---- block_layer2 (+ shortcut) ------------------------------------------
    p2, _ = _im2col_3x3(a1_nhwc, 1)
    K2_pad = _round_up(p2.shape[1], LANE)
    p2p = _pad2(p2, M_pad, K2_pad)
    w2 = _pad2(_w3x3_to_mat(p["w2"]).astype(jnp.bfloat16), K2_pad, N_pad)

    has_proj = (stride != 1) or (in_planes != planes)
    if has_proj:
        # 1x1-conv + BN shortcut, fused into the second conv's kernels.
        xs = x_bf16[:, ::stride, ::stride, :].reshape(M, in_planes)
        Ks_pad = _round_up(in_planes, LANE)
        xsp = _pad2(xs, M_pad, Ks_pad)
        ws = _pad2(p["ws"].reshape(planes, in_planes).T.astype(jnp.bfloat16), Ks_pad, N_pad)

        y2, ys, s2, q2, ssm, qsm = _matmul_stats_fused_call(p2p, w2, xsp, ws, tile_m, n_splits)
        ss2 = _bn_scale_shift(s2, q2, p["g2"], p["b2"], M, N_pad)
        sss = _bn_scale_shift(ssm, qsm, p["gs"], p["bs"], M, N_pad)
        ss_all = jnp.concatenate([ss2, sss], axis=0)     # (4, N_pad)
        out = _apply_call(_bn_add_bn_kernel, (y2, ss_all, ys),
                          tile_m, out_dtype, relu=final_relu)
    else:
        # identity shortcut
        y2, s2, q2 = _matmul_stats_call(p2p, w2, tile_m, n_splits)
        ss2 = _bn_scale_shift(s2, q2, p["g2"], p["b2"], M, N_pad)
        res = _pad2(x_bf16.reshape(M, in_planes), M_pad, N_pad)
        out = _apply_call(_bn_add_res_kernel, (y2, ss2, res),
                          tile_m, out_dtype, relu=final_relu)

    return out[:M, :planes].reshape(B, Ho, Wo, planes)


def res_layer_forward(x_nchw, params, in_planes, out_planes, stride, num_blocks=2):
    """res_layer forward (return_pa=False path).  Dropout2d(p=0) is the identity."""
    x = jnp.transpose(x_nchw, (0, 2, 3, 1))              # NHWC, channels on lanes
    for b in range(num_blocks):
        p = params["block{}".format(b + 1)]
        s = stride if b == 0 else 1
        ip = in_planes if b == 0 else out_planes
        last = b == num_blocks - 1
        # Last block's internal nl is Identity but res_layer applies ReLU right after,
        # so fusing the final ReLU into the last block's epilogue is equivalent.
        x = basic_block(x, p, ip, out_planes, s, final_relu=True,
                        out_dtype=jnp.float32 if last else jnp.bfloat16)
    return jnp.transpose(x.astype(jnp.float32), (0, 3, 1, 2))   # back to NCHW


# --------------------------- pure-JAX reference ------------------------------

def _ref_conv(x, w, stride, pad):
    return jax.lax.conv_general_dilated(
        x, w, (stride, stride), [(pad, pad), (pad, pad)],
        dimension_numbers=("NCHW", "OIHW", "NCHW"))


def _ref_bn(y, gamma, beta, eps=EPS):
    mean = y.mean(axis=(0, 2, 3), keepdims=True)
    var = ((y - mean) ** 2).mean(axis=(0, 2, 3), keepdims=True)
    return (y - mean) * jax.lax.rsqrt(var + eps) * gamma[None, :, None, None] \
        + beta[None, :, None, None]


def _ref_block(x, p, in_planes, planes, stride, final_relu):
    y = jax.nn.relu(_ref_bn(_ref_conv(x, p["w1"], stride, 1), p["g1"], p["b1"]))
    y = _ref_bn(_ref_conv(y, p["w2"], 1, 1), p["g2"], p["b2"])
    if stride != 1 or in_planes != planes:
        s = _ref_bn(_ref_conv(x, p["ws"], stride, 0), p["gs"], p["bs"])
    else:
        s = x
    out = y + s
    return jax.nn.relu(out) if final_relu else out


def res_layer_reference(x, params, in_planes, out_planes, stride, num_blocks=2):
    for b in range(num_blocks):
        p = params["block{}".format(b + 1)]
        s = stride if b == 0 else 1
        ip = in_planes if b == 0 else out_planes
        x = _ref_block(x, p, ip, out_planes, s, final_relu=(b < num_blocks - 1))
    return jax.nn.relu(x)


# --------------------------------- main --------------------------------------

if __name__ == "__main__":
    in_planes, out_planes, stride, num_blocks = 4, 8, 2, 2
    B, H, W = 2, 16, 16

    key = jax.random.PRNGKey(0)
    keys = jax.random.split(key, 12)
    x = jax.random.normal(keys[0], (B, in_planes, H, W), jnp.float32)

    def bn_params(k, n):
        kg, kb = jax.random.split(k)
        return (1.0 + 0.1 * jax.random.normal(kg, (n,), jnp.float32),
                0.1 * jax.random.normal(kb, (n,), jnp.float32))

    g1a, b1a = bn_params(keys[4], out_planes)
    g2a, b2a = bn_params(keys[5], out_planes)
    gsa, bsa = bn_params(keys[6], out_planes)
    g1b, b1b = bn_params(keys[7], out_planes)
    g2b, b2b = bn_params(keys[8], out_planes)

    params = {
        "block1": dict(
            w1=0.1 * jax.random.normal(keys[1], (out_planes, in_planes, 3, 3), jnp.float32),
            g1=g1a, b1=b1a,
            w2=0.1 * jax.random.normal(keys[2], (out_planes, out_planes, 3, 3), jnp.float32),
            g2=g2a, b2=b2a,
            ws=0.1 * jax.random.normal(keys[3], (out_planes, in_planes, 1, 1), jnp.float32),
            gs=gsa, bs=bsa,
        ),
        "block2": dict(
            w1=0.1 * jax.random.normal(keys[9], (out_planes, out_planes, 3, 3), jnp.float32),
            g1=g1b, b1=b1b,
            w2=0.1 * jax.random.normal(keys[10], (out_planes, out_planes, 3, 3), jnp.float32),
            g2=g2b, b2=b2b,
        ),
    }

    fwd = jax.jit(lambda xx, pp: res_layer_forward(xx, pp, in_planes, out_planes,
                                                   stride, num_blocks))
    out = jax.block_until_ready(fwd(x, params))

    ref = jax.block_until_ready(
        res_layer_reference(x, params, in_planes, out_planes, stride, num_blocks))

    assert out.shape == (B, out_planes, H // stride, W // stride), out.shape
    # bf16 MXU operands + bf16 pass-1 intermediates -> compare against the f32 reference
    # at bf16-appropriate tolerance.
    max_err = float(jnp.max(jnp.abs(out - ref)))
    assert jnp.allclose(out, ref, rtol=3e-2, atol=3e-2), max_err

    print("KERNEL_OK")
</pallas_src>

<mosaic_0001>
module attributes {stable_mosaic.version = 11 : i64} {
  func.func @_bn_act_kernel(%arg0: i32, %arg1: memref<128x128xbf16, #tpu.memory_space<vmem>>, %arg2: memref<2x128xf32, #tpu.memory_space<vmem>>, %arg3: memref<128x128xbf16, #tpu.memory_space<vmem>>) attributes {dimension_semantics = [#tpu.dimension_semantics<parallel>], iteration_bounds = array<i64: 1>, scalar_prefetch = 0 : i64, scratch_operands = 0 : i64, tpu.core_type = #tpu.core_type<tc>, window_params = [{transform_indices = @transform_0, window_bounds = array<i64: 128, 128>}, {pipeline_mode = #tpu.pipeline_mode<synchronous>, transform_indices = @transform_1, window_bounds = array<i64: 2, 128>}, {transform_indices = @transform_2, window_bounds = array<i64: 128, 128>}]} {
    %c0 = arith.constant 0 : index
    %c0_0 = arith.constant 0 : index
    %0 = vector.load %arg2[%c0, %c0_0] : memref<2x128xf32, #tpu.memory_space<vmem>>, vector<2x128xf32>
    %c0_1 = arith.constant 0 : index
    %c0_2 = arith.constant 0 : index
    %1 = vector.load %arg1[%c0_1, %c0_2] : memref<128x128xbf16, #tpu.memory_space<vmem>>, vector<128x128xbf16>
    %2 = arith.extf %1 : vector<128x128xbf16> to vector<128x128xf32>
    %3 = vector.extract_strided_slice %0 {offsets = [0, 0], sizes = [1, 128], strides = [1, 1]} : vector<2x128xf32> to vector<1x128xf32>
    %4 = vector.broadcast %3 : vector<1x128xf32> to vector<128x128xf32>
    %5 = arith.mulf %2, %4 : vector<128x128xf32>
    %6 = vector.extract_strided_slice %0 {offsets = [1, 0], sizes = [1, 128], strides = [1, 1]} : vector<2x128xf32> to vector<1x128xf32>
    %7 = vector.broadcast %6 : vector<1x128xf32> to vector<128x128xf32>
    %8 = arith.addf %5, %7 : vector<128x128xf32>
    %cst = arith.constant 0.000000e+00 : f32
    %9 = vector.broadcast %cst : f32 to vector<128x128xf32>
    %10 = arith.maximumf %8, %9 : vector<128x128xf32>
    %11 = arith.truncf %10 : vector<128x128xf32> to vector<128x128xbf16>
    %c0_3 = arith.constant 0 : index
    %c0_4 = arith.constant 0 : index
    %12 = vector.load %arg3[%c0_3, %c0_4] : memref<128x128xbf16, #tpu.memory_space<vmem>>, vector<128x128xbf16>
    tpu.vector_store %arg3[%c0_3, %c0_4], %11 {strides = array<i32>} : memref<128x128xbf16, #tpu.memory_space<vmem>>, vector<128x128xbf16>,
    return
  }
  func.func @transform_0(%arg0: i32) -> (i32, i32) {
    %c0_i32 = arith.constant 0 : i32
    %c0_i32_0 = arith.constant 0 : i32
    return %arg0, %c0_i32 : i32, i32
  }
  func.func @transform_1(%arg0: i32) -> (i32, i32) {
    %c0_i32 = arith.constant 0 : i32
    %c0_i32_0 = arith.constant 0 : i32
    %c0_i32_1 = arith.constant 0 : i32
    return %c0_i32, %c0_i32_0 : i32, i32
  }
  func.func @transform_2(%arg0: i32) -> (i32, i32) {
    %c0_i32 = arith.constant 0 : i32
    %c0_i32_0 = arith.constant 0 : i32
    return %arg0, %c0_i32 : i32, i32
  }
}

module attributes {stable_mosaic.version = 11 : i64} {
  func.func @_matmul_stats_kernel(%arg0: i32, %arg1: i32, %arg2: memref<128x128xbf16, #tpu.memory_space<vmem>>, %arg3: memref<128x128xbf16, #tpu.memory_space<vmem>>, %arg4: memref<128x128xbf16, #tpu.memory_space<vmem>>, %arg5: memref<8x128xf32, #tpu.memory_space<vmem>>, %arg6: memref<8x128xf32, #tpu.memory_space<vmem>>) attributes {dimension_semantics = [#tpu.dimension_semantics<parallel>, #tpu.dimension_semantics<arbitrary>], iteration_bounds = array<i64: 1, 1>, scalar_prefetch = 0 : i64, scratch_operands = 0 : i64, tpu.core_type = #tpu.core_type<tc>, window_params = [{transform_indices = @transform_0, window_bounds = array<i64: 128, 128>}, {pipeline_mode = #tpu.pipeline_mode<synchronous>, transform_indices = @transform_1, window_bounds = array<i64: 128, 128>}, {transform_indices = @transform_2, window_bounds = array<i64: 128, 128>}, {transform_indices = @transform_3, window_bounds = array<i64: 8, 128>}, {transform_indices = @transform_4, window_bounds = array<i64: 8, 128>}]} {
    %c0_i32 = arith.constant 0 : i32
    %0 = arith.cmpi eq, %arg1, %c0_i32 : i32
    %1 = arith.extui %0 : i1 to i32
    %c0_i32_0 = arith.constant 0 : i32
    %2 = arith.cmpi ne, %1, %c0_i32_0 : i32
    scf.if %2 {
      %cst_16 = arith.constant 0.000000e+00 : f32
      %19 = vector.broadcast %cst_16 : f32 to vector<8x128xf32>
      %c0_17 = arith.constant 0 : index
      %c0_18 = arith.constant 0 : index
      %20 = vector.load %arg5[%c0_17, %c0_18] : memref<8x128xf32, #tpu.memory_space<vmem>>, vector<8x128xf32>
      tpu.vector_store %arg5[%c0_17, %c0_18], %19 {strides = array<i32>} : memref<8x128xf32, #tpu.memory_space<vmem>>, vector<8x128xf32>,
      %cst_19 = arith.constant 0.000000e+00 : f32
      %21 = vector.broadcast %cst_19 : f32 to vector<8x128xf32>
      %c0_20 = arith.constant 0 : index
      %c0_21 = arith.constant 0 : index
      %22 = vector.load %arg6[%c0_20, %c0_21] : memref<8x128xf32, #tpu.memory_space<vmem>>, vector<8x128xf32>
      tpu.vector_store %arg6[%c0_20, %c0_21], %21 {strides = array<i32>} : memref<8x128xf32, #tpu.memory_space<vmem>>, vector<8x128xf32>,
    } else {
    }
    %c0 = arith.constant 0 : index
    %c0_1 = arith.constant 0 : index
    %3 = vector.load %arg2[%c0, %c0_1] : memref<128x128xbf16, #tpu.memory_space<vmem>>, vector<128x128xbf16>
    %c0_2 = arith.constant 0 : index
    %c0_3 = arith.constant 0 : index
    %4 = vector.load %arg3[%c0_2, %c0_3] : memref<128x128xbf16, #tpu.memory_space<vmem>>, vector<128x128xbf16>
    %cst = arith.constant dense<0.000000e+00> : vector<128x128xf32>
    %5 = tpu.matmul %3, %4, %cst {dimension_numbers = #tpu.dot_dimension_numbers<[1], [0], [0], [1], [0, 0, 1, 1], [], []>} : vector<128x128xbf16>, vector<128x128xbf16>, vector<128x128xf32> -> vector<128x128xf32>
    %6 = arith.truncf %5 : vector<128x128xf32> to vector<128x128xbf16>
    %c0_4 = arith.constant 0 : index
    %c0_5 = arith.constant 0 : index
    %7 = vector.load %arg4[%c0_4, %c0_5] : memref<128x128xbf16, #tpu.memory_space<vmem>>, vector<128x128xbf16>
    tpu.vector_store %arg4[%c0_4, %c0_5], %6 {strides = array<i32>} : memref<128x128xbf16, #tpu.memory_space<vmem>>, vector<128x128xbf16>,
    %c0_6 = arith.constant 0 : index
    %c0_7 = arith.constant 0 : index
    %8 = vector.load %arg5[%c0_6, %c0_7] : memref<8x128xf32, #tpu.memory_space<vmem>>, vector<1x128xf32>
    %cst_8 = arith.constant dense<0.000000e+00> : vector<128xf32>
    %9 = vector.multi_reduction <add>, %5, %cst_8 [0] : vector<128x128xf32> to vector<128xf32>
    %10 = vector.shape_cast %9 : vector<128xf32> to vector<1x128xf32>
    %11 = arith.addf %8, %10 : vector<1x128xf32>
    %c0_9 = arith.constant 0 : index
    %c0_10 = arith.constant 0 : index
    %12 = vector.load %arg5[%c0_9, %c0_10] : memref<8x128xf32, #tpu.memory_space<vmem>>, vector<1x128xf32>
    tpu.vector_store %arg5[%c0_9, %c0_10], %11 {strides = array<i32>} : memref<8x128xf32, #tpu.memory_space<vmem>>, vector<1x128xf32>,
    %c0_11 = arith.constant 0 : index
    %c0_12 = arith.constant 0 : index
    %13 = vector.load %arg6[%c0_11, %c0_12] : memref<8x128xf32, #tpu.memory_space<vmem>>, vector<1x128xf32>
    %14 = arith.mulf %5, %5 : vector<128x128xf32>
    %cst_13 = arith.constant dense<0.000000e+00> : vector<128xf32>
    %15 = vector.multi_reduction <add>, %14, %cst_13 [0] : vector<128x128xf32> to vector<128xf32>
    %16 = vector.shape_cast %15 : vector<128xf32> to vector<1x128xf32>
    %17 = arith.addf %13, %16 : vector<1x128xf32>
    %c0_14 = arith.constant 0 : index
    %c0_15 = arith.constant 0 : index
    %18 = vector.load %arg6[%c0_14, %c0_15] : memref<8x128xf32, #tpu.memory_space<vmem>>, vector<1x128xf32>
    tpu.vector_store %arg6[%c0_14, %c0_15], %17 {strides = array<i32>} : memref<8x128xf32, #tpu.memory_space<vmem>>, vector<1x128xf32>,
    return
  }
  func.func @transform_0(%arg0: i32, %arg1: i32) -> (i32, i32) {
    %c1_i32 = arith.constant 1 : i32
    %0 = arith.muli %arg0, %c1_i32 : i32
    %1 = arith.addi %0, %arg1 : i32
    %c0_i32 = arith.constant 0 : i32
    %c0_i32_0 = arith.constant 0 : i32
    return %1, %c0_i32 : i32, i32
  }
  func.func @transform_1(%arg0: i32, %arg1: i32) -> (i32, i32) {
    %c0_i32 = arith.constant 0 : i32
    %c0_i32_0 = arith.constant 0 : i32
    %c0_i32_1 = arith.constant 0 : i32
    return %c0_i32, %c0_i32_0 : i32, i32
  }
  func.func @transform_2(%arg0: i32, %arg1: i32) -> (i32, i32) {
    %c1_i32 = arith.constant 1 : i32
    %0 = arith.muli %arg0, %c1_i32 : i32
    %1 = arith.addi %0, %arg1 : i32
    %c0_i32 = arith.constant 0 : i32
    %c0_i32_0 = arith.constant 0 : i32
    return %1, %c0_i32 : i32, i32
  }
  func.func @transform_3(%arg0: i32, %arg1: i32) -> (i32, i32) {
    %c0_i32 = arith.constant 0 : i32
    %c0_i32_0 = arith.constant 0 : i32
    return %arg0, %c0_i32 : i32, i32
  }
  func.func @transform_4(%arg0: i32, %arg1: i32) -> (i32, i32) {
    %c0_i32 = arith.constant 0 : i32
    %c0_i32_0 = arith.constant 0 : i32
    return %arg0, %c0_i32 : i32, i32
  }
}

module attributes {stable_mosaic.version = 11 : i64} {
  func.func @_bn_add_res_kernel(%arg0: i32, %arg1: memref<128x128xbf16, #tpu.memory_space<vmem>>, %arg2: memref<2x128xf32, #tpu.memory_space<vmem>>, %arg3: memref<128x128xbf16, #tpu.memory_space<vmem>>, %arg4: memref<128x128xf32, #tpu.memory_space<vmem>>) attributes {dimension_semantics = [#tpu.dimension_semantics<parallel>], iteration_bounds = array<i64: 1>, scalar_prefetch = 0 : i64, scratch_operands = 0 : i64, tpu.core_type = #tpu.core_type<tc>, window_params = [{transform_indices = @transform_0, window_bounds = array<i64: 128, 128>}, {pipeline_mode = #tpu.pipeline_mode<synchronous>, transform_indices = @transform_1, window_bounds = array<i64: 2, 128>}, {transform_indices = @transform_2, window_bounds = array<i64: 128, 128>}, {transform_indices = @transform_3, window_bounds = array<i64: 128, 128>}]} {
    %c0 = arith.constant 0 : index
    %c0_0 = arith.constant 0 : index
    %0 = vector.load %arg2[%c0, %c0_0] : memref<2x128xf32, #tpu.memory_space<vmem>>, vector<2x128xf32>
    %c0_1 = arith.constant 0 : index
    %c0_2 = arith.constant 0 : index
    %1 = vector.load %arg1[%c0_1, %c0_2] : memref<128x128xbf16, #tpu.memory_space<vmem>>, vector<128x128xbf16>
    %2 = arith.extf %1 : vector<128x128xbf16> to vector<128x128xf32>
    %3 = vector.extract_strided_slice %0 {offsets = [0, 0], sizes = [1, 128], strides = [1, 1]} : vector<2x128xf32> to vector<1x128xf32>
    %4 = vector.broadcast %3 : vector<1x128xf32> to vector<128x128xf32>
    %5 = arith.mulf %2, %4 : vector<128x128xf32>
    %6 = vector.extract_strided_slice %0 {offsets = [1, 0], sizes = [1, 128], strides = [1, 1]} : vector<2x128xf32> to vector<1x128xf32>
    %7 = vector.broadcast %6 : vector<1x128xf32> to vector<128x128xf32>
    %8 = arith.addf %5, %7 : vector<128x128xf32>
    %c0_3 = arith.constant 0 : index
    %c0_4 = arith.constant 0 : index
    %9 = vector.load %arg3[%c0_3, %c0_4] : memref<128x128xbf16, #tpu.memory_space<vmem>>, vector<128x128xbf16>
    %10 = arith.extf %9 : vector<128x128xbf16> to vector<128x128xf32>
    %11 = arith.addf %8, %10 : vector<128x128xf32>
    %cst = arith.constant 0.000000e+00 : f32
    %12 = vector.broadcast %cst : f32 to vector<128x128xf32>
    %13 = arith.maximumf %11, %12 : vector<128x128xf32>
    %c0_5 = arith.constant 0 : index
    %c0_6 = arith.constant 0 : index
    %14 = vector.load %arg4[%c0_5, %c0_6] : memref<128x128xf32, #tpu.memory_space<vmem>>, vector<128x128xf32>
    tpu.vector_store %arg4[%c0_5, %c0_6], %13 {strides = array<i32>} : memref<128x128xf32, #tpu.memory_space<vmem>>, vector<128x128xf32>,
    return
  }
  func.func @transform_0(%arg0: i32) -> (i32, i32) {
    %c0_i32 = arith.constant 0 : i32
    %c0_i32_0 = arith.constant 0 : i32
    return %arg0, %c0_i32 : i32, i32
  }
  func.func @transform_1(%arg0: i32) -> (i32, i32) {
    %c0_i32 = arith.constant 0 : i32
    %c0_i32_0 = arith.constant 0 : i32
    %c0_i32_1 = arith.constant 0 : i32
    return %c0_i32, %c0_i32_0 : i32, i32
  }
  func.func @transform_2(%arg0: i32) -> (i32, i32) {
    %c0_i32 = arith.constant 0 : i32
    %c0_i32_0 = arith.constant 0 : i32
    return %arg0, %c0_i32 : i32, i32
  }
  func.func @transform_3(%arg0: i32) -> (i32, i32) {
    %c0_i32 = arith.constant 0 : i32
    %c0_i32_0 = arith.constant 0 : i32
    return %arg0, %c0_i32 : i32, i32
  }
}

module attributes {stable_mosaic.version = 11 : i64} {
  func.func @_bn_add_bn_kernel(%arg0: i32, %arg1: memref<128x128xbf16, #tpu.memory_space<vmem>>, %arg2: memref<4x128xf32, #tpu.memory_space<vmem>>, %arg3: memref<128x128xbf16, #tpu.memory_space<vmem>>, %arg4: memref<128x128xbf16, #tpu.memory_space<vmem>>) attributes {dimension_semantics = [#tpu.dimension_semantics<parallel>], iteration_bounds = array<i64: 1>, scalar_prefetch = 0 : i64, scratch_operands = 0 : i64, tpu.core_type = #tpu.core_type<tc>, window_params = [{transform_indices = @transform_0, window_bounds = array<i64: 128, 128>}, {pipeline_mode = #tpu.pipeline_mode<synchronous>, transform_indices = @transform_1, window_bounds = array<i64: 4, 128>}, {transform_indices = @transform_2, window_bounds = array<i64: 128, 128>}, {transform_indices = @transform_3, window_bounds = array<i64: 128, 128>}]} {
    %c0 = arith.constant 0 : index
    %c0_0 = arith.constant 0 : index
    %0 = vector.load %arg2[%c0, %c0_0] : memref<4x128xf32, #tpu.memory_space<vmem>>, vector<4x128xf32>
    %c0_1 = arith.constant 0 : index
    %c0_2 = arith.constant 0 : index
    %1 = vector.load %arg1[%c0_1, %c0_2] : memref<128x128xbf16, #tpu.memory_space<vmem>>, vector<128x128xbf16>
    %2 = arith.extf %1 : vector<128x128xbf16> to vector<128x128xf32>
    %3 = vector.extract_strided_slice %0 {offsets = [0, 0], sizes = [1, 128], strides = [1, 1]} : vector<4x128xf32> to vector<1x128xf32>
    %4 = vector.broadcast %3 : vector<1x128xf32> to vector<128x128xf32>
    %5 = arith.mulf %2, %4 : vector<128x128xf32>
    %6 = vector.extract_strided_slice %0 {offsets = [1, 0], sizes = [1, 128], strides = [1, 1]} : vector<4x128xf32> to vector<1x128xf32>
    %7 = vector.broadcast %6 : vector<1x128xf32> to vector<128x128xf32>
    %8 = arith.addf %5, %7 : vector<128x128xf32>
    %c0_3 = arith.constant 0 : index
    %c0_4 = arith.constant 0 : index
    %9 = vector.load %arg3[%c0_3, %c0_4] : memref<128x128xbf16, #tpu.memory_space<vmem>>, vector<128x128xbf16>
    %10 = arith.extf %9 : vector<128x128xbf16> to vector<128x128xf32>
    %11 = vector.extract_strided_slice %0 {offsets = [2, 0], sizes = [1, 128], strides = [1, 1]} : vector<4x128xf32> to vector<1x128xf32>
    %12 = vector.broadcast %11 : vector<1x128xf32> to vector<128x128xf32>
    %13 = arith.mulf %10, %12 : vector<128x128xf32>
    %14 = arith.addf %8, %13 : vector<128x128xf32>
    %15 = vector.extract_strided_slice %0 {offsets = [3, 0], sizes = [1, 128], strides = [1, 1]} : vector<4x128xf32> to vector<1x128xf32>
    %16 = vector.broadcast %15 : vector<1x128xf32> to vector<128x128xf32>
    %17 = arith.addf %14, %16 : vector<128x128xf32>
    %cst = arith.constant 0.000000e+00 : f32
    %18 = vector.broadcast %cst : f32 to vector<128x128xf32>
    %19 = arith.maximumf %17, %18 : vector<128x128xf32>
    %20 = arith.truncf %19 : vector<128x128xf32> to vector<128x128xbf16>
    %c0_5 = arith.constant 0 : index
    %c0_6 = arith.constant 0 : index
    %21 = vector.load %arg4[%c0_5, %c0_6] : memref<128x128xbf16, #tpu.memory_space<vmem>>, vector<128x128xbf16>
    tpu.vector_store %arg4[%c0_5, %c0_6], %20 {strides = array<i32>} : memref<128x128xbf16, #tpu.memory_space<vmem>>, vector<128x128xbf16>,
    return
  }
  func.func @transform_0(%arg0: i32) -> (i32, i32) {
    %c0_i32 = arith.constant 0 : i32
    %c0_i32_0 = arith.constant 0 : i32
    return %arg0, %c0_i32 : i32, i32
  }
  func.func @transform_1(%arg0: i32) -> (i32, i32) {
    %c0_i32 = arith.constant 0 : i32
    %c0_i32_0 = arith.constant 0 : i32
    %c0_i32_1 = arith.constant 0 : i32
    return %c0_i32, %c0_i32_0 : i32, i32
  }
  func.func @transform_2(%arg0: i32) -> (i32, i32) {
    %c0_i32 = arith.constant 0 : i32
    %c0_i32_0 = arith.constant 0 : i32
    return %arg0, %c0_i32 : i32, i32
  }
  func.func @transform_3(%arg0: i32) -> (i32, i32) {
    %c0_i32 = arith.constant 0 : i32
    %c0_i32_0 = arith.constant 0 : i32
    return %arg0, %c0_i32 : i32, i32
  }
}

module attributes {stable_mosaic.version = 11 : i64} {
  func.func @_matmul_stats_fused_kernel(%arg0: i32, %arg1: i32, %arg2: memref<128x128xbf16, #tpu.memory_space<vmem>>, %arg3: memref<128x128xbf16, #tpu.memory_space<vmem>>, %arg4: memref<128x128xbf16, #tpu.memory_space<vmem>>, %arg5: memref<128x128xbf16, #tpu.memory_space<vmem>>, %arg6: memref<128x128xbf16, #tpu.memory_space<vmem>>, %arg7: memref<128x128xbf16, #tpu.memory_space<vmem>>, %arg8: memref<8x128xf32, #tpu.memory_space<vmem>>, %arg9: memref<8x128xf32, #tpu.memory_space<vmem>>, %arg10: memref<8x128xf32, #tpu.memory_space<vmem>>, %arg11: memref<8x128xf32, #tpu.memory_space<vmem>>) attributes {dimension_semantics = [#tpu.dimension_semantics<parallel>, #tpu.dimension_semantics<arbitrary>], iteration_bounds = array<i64: 1, 1>, scalar_prefetch = 0 : i64, scratch_operands = 0 : i64, tpu.core_type = #tpu.core_type<tc>, window_params = [{transform_indices = @transform_0, window_bounds = array<i64: 128, 128>}, {pipeline_mode = #tpu.pipeline_mode<synchronous>, transform_indices = @transform_1, window_bounds = array<i64: 128, 128>}, {transform_indices = @transform_2, window_bounds = array<i64: 128, 128>}, {pipeline_mode = #tpu.pipeline_mode<synchronous>, transform_indices = @transform_3, window_bounds = array<i64: 128, 128>}, {transform_indices = @transform_4, window_bounds = array<i64: 128, 128>}, {transform_indices = @transform_5, window_bounds = array<i64: 128, 128>}, {transform_indices = @transform_6, window_bounds = array<i64: 8, 128>}, {transform_indices = @transform_7, window_bounds = array<i64: 8, 128>}, {transform_indices = @transform_8, window_bounds = array<i64: 8, 128>}, {transform_indices = @transform_9, window_bounds = array<i64: 8, 128>}]} {
    %c0_i32 = arith.constant 0 : i32
    %0 = arith.cmpi eq, %arg1, %c0_i32 : i32
    %1 = arith.extui %0 : i1 to i32
    %c0_i32_0 = arith.constant 0 : i32
    %2 = arith.cmpi ne, %1, %c0_i32_0 : i32
    scf.if %2 {
      %cst_33 = arith.constant 0.000000e+00 : f32
      %35 = vector.broadcast %cst_33 : f32 to vector<8x128xf32>
      %c0_34 = arith.constant 0 : index
      %c0_35 = arith.constant 0 : index
      %36 = vector.load %arg8[%c0_34, %c0_35] : memref<8x128xf32, #tpu.memory_space<vmem>>, vector<8x128xf32>
      tpu.vector_store %arg8[%c0_34, %c0_35], %35 {strides = array<i32>} : memref<8x128xf32, #tpu.memory_space<vmem>>, vector<8x128xf32>,
      %cst_36 = arith.constant 0.000000e+00 : f32
      %37 = vector.broadcast %cst_36 : f32 to vector<8x128xf32>
      %c0_37 = arith.constant 0 : index
      %c0_38 = arith.constant 0 : index
      %38 = vector.load %arg9[%c0_37, %c0_38] : memref<8x128xf32, #tpu.memory_space<vmem>>, vector<8x128xf32>
      tpu.vector_store %arg9[%c0_37, %c0_38], %37 {strides = array<i32>} : memref<8x128xf32, #tpu.memory_space<vmem>>, vector<8x128xf32>,
      %cst_39 = arith.constant 0.000000e+00 : f32
      %39 = vector.broadcast %cst_39 : f32 to vector<8x128xf32>
      %c0_40 = arith.constant 0 : index
      %c0_41 = arith.constant 0 : index
      %40 = vector.load %arg10[%c0_40, %c0_41] : memref<8x128xf32, #tpu.memory_space<vmem>>, vector<8x128xf32>
      tpu.vector_store %arg10[%c0_40, %c0_41], %39 {strides = array<i32>} : memref<8x128xf32, #tpu.memory_space<vmem>>, vector<8x128xf32>,
      %cst_42 = arith.constant 0.000000e+00 : f32
      %41 = vector.broadcast %cst_42 : f32 to vector<8x128xf32>
      %c0_43 = arith.constant 0 : index
      %c0_44 = arith.constant 0 : index
      %42 = vector.load %arg11[%c0_43, %c0_44] : memref<8x128xf32, #tpu.memory_space<vmem>>, vector<8x128xf32>
      tpu.vector_store %arg11[%c0_43, %c0_44], %41 {strides = array<i32>} : memref<8x128xf32, #tpu.memory_space<vmem>>, vector<8x128xf32>,
    } else {
    }
    %c0 = arith.constant 0 : index
    %c0_1 = arith.constant 0 : index
    %3 = vector.load %arg2[%c0, %c0_1] : memref<128x128xbf16, #tpu.memory_space<vmem>>, vector<128x128xbf16>
    %c0_2 = arith.constant 0 : index
    %c0_3 = arith.constant 0 : index
    %4 = vector.load %arg3[%c0_2, %c0_3] : memref<128x128xbf16, #tpu.memory_space<vmem>>, vector<128x128xbf16>
    %cst = arith.constant dense<0.000000e+00> : vector<128x128xf32>
    %5 = tpu.matmul %3, %4, %cst {dimension_numbers = #tpu.dot_dimension_numbers<[1], [0], [0], [1], [0, 0, 1, 1], [], []>} : vector<128x128xbf16>, vector<128x128xbf16>, vector<128x128xf32> -> vector<128x128xf32>
    %c0_4 = arith.constant 0 : index
    %c0_5 = arith.constant 0 : index
    %6 = vector.load %arg4[%c0_4, %c0_5] : memref<128x128xbf16, #tpu.memory_space<vmem>>, vector<128x128xbf16>
    %c0_6 = arith.constant 0 : index
    %c0_7 = arith.constant 0 : index
    %7 = vector.load %arg5[%c0_6, %c0_7] : memref<128x128xbf16, #tpu.memory_space<vmem>>, vector<128x128xbf16>
    %cst_8 = arith.constant dense<0.000000e+00> : vector<128x128xf32>
    %8 = tpu.matmul %6, %7, %cst_8 {dimension_numbers = #tpu.dot_dimension_numbers<[1], [0], [0], [1], [0, 0, 1, 1], [], []>} : vector<128x128xbf16>, vector<128x128xbf16>, vector<128x128xf32> -> vector<128x128xf32>
    %9 = arith.truncf %5 : vector<128x128xf32> to vector<128x128xbf16>
    %c0_9 = arith.constant 0 : index
    %c0_10 = arith.constant 0 : index
    %10 = vector.load %arg6[%c0_9, %c0_10] : memref<128x128xbf16, #tpu.memory_space<vmem>>, vector<128x128xbf16>
    tpu.vector_store %arg6[%c0_9, %c0_10], %9 {strides = array<i32>} : memref<128x128xbf16, #tpu.memory_space<vmem>>, vector<128x128xbf16>,
    %11 = arith.truncf %8 : vector<128x128xf32> to vector<128x128xbf16>
    %c0_11 = arith.constant 0 : index
    %c0_12 = arith.constant 0 : index
    %12 = vector.load %arg7[%c0_11, %c0_12] : memref<128x128xbf16, #tpu.memory_space<vmem>>, vector<128x128xbf16>
    tpu.vector_store %arg7[%c0_11, %c0_12], %11 {strides = array<i32>} : memref<128x128xbf16, #tpu.memory_space<vmem>>, vector<128x128xbf16>,
    %c0_13 = arith.constant 0 : index
    %c0_14 = arith.constant 0 : index
    %13 = vector.load %arg8[%c0_13, %c0_14] : memref<8x128xf32, #tpu.memory_space<vmem>>, vector<1x128xf32>
    %cst_15 = arith.constant dense<0.000000e+00> : vector<128xf32>
    %14 = vector.multi_reduction <add>, %5, %cst_15 [0] : vector<128x128xf32> to vector<128xf32>
    %15 = vector.shape_cast %14 : vector<128xf32> to vector<1x128xf32>
    %16 = arith.addf %13, %15 : vector<1x128xf32>
    %c0_16 = arith.constant 0 : index
    %c0_17 = arith.constant 0 : index
    %17 = vector.load %arg8[%c0_16, %c0_17] : memref<8x128xf32, #tpu.memory_space<vmem>>, vector<1x128xf32>
    tpu.vector_store %arg8[%c0_16, %c0_17], %16 {strides = array<i32>} : memref<8x128xf32, #tpu.memory_space<vmem>>, vector<1x128xf32>,
    %c0_18 = arith.constant 0 : index
    %c0_19 = arith.constant 0 : index
    %18 = vector.load %arg9[%c0_18, %c0_19] : memref<8x128xf32, #tpu.memory_space<vmem>>, vector<1x128xf32>
    %19 = arith.mulf %5, %5 : vector<128x128xf32>
    %cst_20 = arith.constant dense<0.000000e+00> : vector<128xf32>
    %20 = vector.multi_reduction <add>, %19, %cst_20 [0] : vector<128x128xf32> to vector<128xf32>
    %21 = vector.shape_cast %20 : vector<128xf32> to vector<1x128xf32>
    %22 = arith.addf %18, %21 : vector<1x128xf32>
    %c0_21 = arith.constant 0 : index
    %c0_22 = arith.constant 0 : index
    %23 = vector.load %arg9[%c0_21, %c0_22] : memref<8x128xf32, #tpu.memory_space<vmem>>, vector<1x128xf32>
    tpu.vector_store %arg9[%c0_21, %c0_22], %22 {strides = array<i32>} : memref<8x128xf32, #tpu.memory_space<vmem>>, vector<1x128xf32>,
    %c0_23 = arith.constant 0 : index
    %c0_24 = arith.constant 0 : index
    %24 = vector.load %arg10[%c0_23, %c0_24] : memref<8x128xf32, #tpu.memory_space<vmem>>, vector<1x128xf32>
    %cst_25 = arith.constant dense<0.000000e+00> : vector<128xf32>
    %25 = vector.multi_reduction <add>, %8, %cst_25 [0] : vector<128x128xf32> to vector<128xf32>
    %26 = vector.shape_cast %25 : vector<128xf32> to vector<1x128xf32>
    %27 = arith.addf %24, %26 : vector<1x128xf32>
    %c0_26 = arith.constant 0 : index
    %c0_27 = arith.constant 0 : index
    %28 = vector.load %arg10[%c0_26, %c0_27] : memref<8x128xf32, #tpu.memory_space<vmem>>, vector<1x128xf32>
    tpu.vector_store %arg10[%c0_26, %c0_27], %27 {strides = array<i32>} : memref<8x128xf32, #tpu.memory_space<vmem>>, vector<1x128xf32>,
    %c0_28 = arith.constant 0 : index
    %c0_29 = arith.constant 0 : index
    %29 = vector.load %arg11[%c0_28, %c0_29] : memref<8x128xf32, #tpu.memory_space<vmem>>, vector<1x128xf32>
    %30 = arith.mulf %8, %8 : vector<128x128xf32>
    %cst_30 = arith.constant dense<0.000000e+00> : vector<128xf32>
    %31 = vector.multi_reduction <add>, %30, %cst_30 [0] : vector<128x128xf32> to vector<128xf32>
    %32 = vector.shape_cast %31 : vector<128xf32> to vector<1x128xf32>
    %33 = arith.addf %29, %32 : vector<1x128xf32>
    %c0_31 = arith.constant 0 : index
    %c0_32 = arith.constant 0 : index
    %34 = vector.load %arg11[%c0_31, %c0_32] : memref<8x128xf32, #tpu.memory_space<vmem>>, vector<1x128xf32>
    tpu.vector_store %arg11[%c0_31, %c0_32], %33 {strides = array<i32>} : memref<8x128xf32, #tpu.memory_space<vmem>>, vector<1x128xf32>,
    return
  }
  func.func @transform_0(%arg0: i32, %arg1: i32) -> (i32, i32) {
    %c1_i32 = arith.constant 1 : i32
    %0 = arith.muli %arg0, %c1_i32 : i32
    %1 = arith.addi %0, %arg1 : i32
    %c0_i32 = arith.constant 0 : i32
    %c0_i32_0 = arith.constant 0 : i32
    return %1, %c0_i32 : i32, i32
  }
  func.func @transform_1(%arg0: i32, %arg1: i32) -> (i32, i32) {
    %c0_i32 = arith.constant 0 : i32
    %c0_i32_0 = arith.constant 0 : i32
    %c0_i32_1 = arith.constant 0 : i32
    return %c0_i32, %c0_i32_0 : i32, i32
  }
  func.func @transform_2(%arg0: i32, %arg1: i32) -> (i32, i32) {
    %c1_i32 = arith.constant 1 : i32
    %0 = arith.muli %arg0, %c1_i32 : i32
    %1 = arith.addi %0, %arg1 : i32
    %c0_i32 = arith.constant 0 : i32
    %c0_i32_0 = arith.constant 0 : i32
    return %1, %c0_i32 : i32, i32
  }
  func.func @transform_3(%arg0: i32, %arg1: i32) -> (i32, i32) {
    %c0_i32 = arith.constant 0 : i32
    %c0_i32_0 = arith.constant 0 : i32
    %c0_i32_1 = arith.constant 0 : i32
    return %c0_i32, %c0_i32_0 : i32, i32
  }
  func.func @transform_4(%arg0: i32, %arg1: i32) -> (i32, i32) {
    %c1_i32 = arith.constant 1 : i32
    %0 = arith.muli %arg0, %c1_i32 : i32
    %1 = arith.addi %0, %arg1 : i32
    %c0_i32 = arith.constant 0 : i32
    %c0_i32_0 = arith.constant 0 : i32
    return %1, %c0_i32 : i32, i32
  }
  func.func @transform_5(%arg0: i32, %arg1: i32) -> (i32, i32) {
    %c1_i32 = arith.constant 1 : i32
    %0 = arith.muli %arg0, %c1_i32 : i32
    %1 = arith.addi %0, %arg1 : i32
    %c0_i32 = arith.constant 0 : i32
    %c0_i32_0 = arith.constant 0 : i32
    return %1, %c0_i32 : i32, i32
  }
  func.func @transform_6(%arg0: i32, %arg1: i32) -> (i32, i32) {
    %c0_i32 = arith.constant 0 : i32
    %c0_i32_0 = arith.constant 0 : i32
    return %arg0, %c0_i32 : i32, i32
  }
  func.func @transform_7(%arg0: i32, %arg1: i32) -> (i32, i32) {
    %c0_i32 = arith.constant 0 : i32
    %c0_i32_0 = arith.constant 0 : i32
    return %arg0, %c0_i32 : i32, i32
  }
  func.func @transform_8(%arg0: i32, %arg1: i32) -> (i32, i32) {
    %c0_i32 = arith.constant 0 : i32
    %c0_i32_0 = arith.constant 0 : i32
    return %arg0, %c0_i32 : i32, i32
  }
  func.func @transform_9(%arg0: i32, %arg1: i32) -> (i32, i32) {
    %c0_i32 = arith.constant 0 : i32
    %c0_i32_0 = arith.constant 0 : i32
    return %arg0, %c0_i32 : i32, i32
  }
}

</mosaic_0001>

<bundles_post_ra>
// kernel: _lambda_.9
= control target key start
LH: loop header
LB: loop body
LE: loop exit
PB: predicated region body
PF: predicated region fallthrough
CT: control target
= control target key end

     0   :  { %v44_v0 = vlaneseq  ;;  %s368_s0 = inlined_call_operand.vmem [shape: bf16[128,128], index: 0, kind: input, shape index: {}]   ;;  %s369_s1 = inlined_call_operand.vmem [shape: f32[2,128], index: 1, kind: input, shape index: {}]   ;;  %s370_s2 = inlined_call_operand.vmem [shape: bf16[128,128], index: 2, kind: output, shape index: {}]  }
   0x1   :  { %v217_v1 = vld [vmem:[%s368_s0] sm:$0xff]   ;;  %v288_v2 = vld [vmem:[%s368_s0 + $0x8] sm:$0xff]   ;;  %v289_v4 = vld [vmem:[%s368_s0 + $0x10] sm:$0xff]  }
   0x2   :  { %v45_v3 = vshrl.u32 %v44_v0, 7  ;;  %v290_v5 = vld [vmem:[%s368_s0 + $0x18] sm:$0xff]   ;;  %v291_v6 = vld [vmem:[%s368_s0 + $0x20] sm:$0xff]   ;;  %v218_v8 = vunpack.c.l.bf16 %v217_v1  ;;  %v219_v9 = vunpack.c.h.bf16 %v217_v1  ;;  %v222_v10 = vunpack.c.l.bf16 %v288_v2  ;;  %v292_v12 = vld [vmem:[%s368_s0 + $0x28] sm:$0xff]  }
   0x3   :  { %v11_v7 = vld [vmem:[%s369_s1] sm:$0x3]  ;;  %v223_v11 = vunpack.c.h.bf16 %v288_v2  ;;  %v226_v15 = vunpack.c.l.bf16 %v289_v4  ;;  %v227_v16 = vunpack.c.h.bf16 %v289_v4  ;;  %v293_v17 = vld [vmem:[%s368_s0 + $0x30] sm:$0xff]   ;;  %v294_v18 = vld [vmem:[%s368_s0 + $0x38] sm:$0xff]   ;;  %v230_v19 = vunpack.c.l.bf16 %v290_v5 }
   0x4   :  { %v46_v13 = vsub.s32 0, %v45_v3  ;;  %v66_v14 = vsub.s32 1, %v45_v3  ;;  %v231_v20 = vunpack.c.h.bf16 %v290_v5  ;;  %v234_v21 = vunpack.c.l.bf16 %v291_v6 }
   0x5   :  { %v235_v22 = vunpack.c.h.bf16 %v291_v6  ;;  %v238_v25 = vunpack.c.l.bf16 %v292_v12  ;;  %v239_v26 = vunpack.c.h.bf16 %v292_v12  ;;  %v242_v27 = vunpack.c.l.bf16 %v293_v17 }
   0x6   :  { %v47_v23 = vrot.slane %v11_v7, %v46_v13  ;;  %v67_v24 = vrot.slane %v11_v7, %v66_v14  ;;  %v243_v28 = vunpack.c.h.bf16 %v293_v17  ;;  %v246_v29 = vunpack.c.l.bf16 %v294_v18 }
   0x7   :  { %v247_v30 = vunpack.c.h.bf16 %v294_v18 }
   0x8   :  { %v48_v31 = vmul.f32 %v218_v8, %v47_v23  ;;  %v49_v32 = vmul.f32 %v219_v9, %v47_v23  ;;  %v50_v33 = vmul.f32 %v222_v10, %v47_v23  ;;  %v51_v34 = vmul.f32 %v223_v11, %v47_v23 }
   0x9   :  { %v52_v35 = vmul.f32 %v226_v15, %v47_v23  ;;  %v53_v36 = vmul.f32 %v227_v16, %v47_v23  ;;  %v54_v37 = vmul.f32 %v230_v19, %v47_v23  ;;  %v55_v38 = vmul.f32 %v231_v20, %v47_v23 }
   0xa   :  { %v68_v39 = vadd.f32 %v67_v24, %v48_v31  ;;  %v69_v40 = vadd.f32 %v67_v24, %v49_v32  ;;  %v70_v41 = vadd.f32 %v67_v24, %v50_v33  ;;  %v71_v42 = vadd.f32 %v67_v24, %v51_v34 }
   0xb   :  { %v72_v43 = vadd.f32 %v67_v24, %v52_v35  ;;  %v73_v44 = vadd.f32 %v67_v24, %v53_v36  ;;  %v74_v45 = vadd.f32 %v67_v24, %v54_v37  ;;  %v75_v46 = vadd.f32 %v67_v24, %v55_v38 }
   0xc   :  { %v84_v47 = vmax.f32 %v68_v39, 0.0  ;;  %v85_v48 = vmax.f32 %v69_v40, 0.0  ;;  %v86_v49 = vmax.f32 %v70_v41, 0.0  ;;  %v87_v50 = vmax.f32 %v71_v42, 0.0 }
   0xd   :  { %v88_v51 = vmax.f32 %v72_v43, 0.0  ;;  %v89_v52 = vmax.f32 %v73_v44, 0.0  ;;  %v90_v53 = vmax.f32 %v74_v45, 0.0  ;;  %v91_v54 = vmax.f32 %v75_v46, 0.0 }
   0xe   :  { %v251_v55 = vpack.c.bf16 %v85_v48, %v84_v47  ;;  %v256_v56 = vpack.c.bf16 %v87_v50, %v86_v49  ;;  %v56_v57 = vmul.f32 %v234_v21, %v47_v23  ;;  %v57_v58 = vmul.f32 %v235_v22, %v47_v23 }
   0xf   :  { %v261_v59 = vpack.c.bf16 %v89_v52, %v88_v51  ;;  %v266_v60 = vpack.c.bf16 %v91_v54, %v90_v53  ;;  %v58_v61 = vmul.f32 %v238_v25, %v47_v23  ;;  %v59_v62 = vmul.f32 %v239_v26, %v47_v23 }
  0x10   :  { %252 = vst [vmem:[%s370_s2] sm:$0xff] %v251_v55   ;;  %295 = vst [vmem:[%s370_s2 + $0x8] sm:$0xff] %v256_v56   ;;  %v76_v63 = vadd.f32 %v67_v24, %v56_v57  ;;  %v77_v0 = vadd.f32 %v67_v24, %v57_v58  ;;  %v60_v1 = vmul.f32 %v242_v27, %v47_v23 }
  0x11   :  { %v61_v2 = vmul.f32 %v243_v28, %v47_v23  ;;  %296 = vst [vmem:[%s370_s2 + $0x10] sm:$0xff] %v261_v59   ;;  %297 = vst [vmem:[%s370_s2 + $0x18] sm:$0xff] %v266_v60   ;;  %v78_v3 = vadd.f32 %v67_v24, %v58_v61  ;;  %v79_v4 = vadd.f32 %v67_v24, %v59_v62 }
  0x12   :  { %v62_v5 = vmul.f32 %v246_v29, %v47_v23  ;;  %v63_v6 = vmul.f32 %v247_v30, %v47_v23  ;;  %v92_v7 = vmax.f32 %v76_v63, 0.0  ;;  %v93_v8 = vmax.f32 %v77_v0, 0.0 }
  0x13   :  { %v80_v9 = vadd.f32 %v67_v24, %v60_v1  ;;  %v81_v10 = vadd.f32 %v67_v24, %v61_v2  ;;  %v94_v11 = vmax.f32 %v78_v3, 0.0  ;;  %v95_v12 = vmax.f32 %v79_v4, 0.0 }
  0x14   :  { %v82_v13 = vadd.f32 %v67_v24, %v62_v5  ;;  %v83_v14 = vadd.f32 %v67_v24, %v63_v6  ;;  %v271_v15 = vpack.c.bf16 %v93_v8, %v92_v7 }
  0x15   :  { %v96_v16 = vmax.f32 %v80_v9, 0.0  ;;  %v97_v17 = vmax.f32 %v81_v10, 0.0  ;;  %v276_v18 = vpack.c.bf16 %v95_v12, %v94_v11 }
  0x16   :  { %v98_v19 = vmax.f32 %v82_v13, 0.0  ;;  %v99_v20 = vmax.f32 %v83_v14, 0.0  ;;  %298 = vst [vmem:[%s370_s2 + $0x20] sm:$0xff] %v271_v15  }
  0x17   :  { %v281_v21 = vpack.c.bf16 %v97_v17, %v96_v16  ;;  %299 = vst [vmem:[%s370_s2 + $0x28] sm:$0xff] %v276_v18  }
  0x18   :  { %v286_v22 = vpack.c.bf16 %v99_v20, %v98_v19 }
  0x19   :  { %300 = vst [vmem:[%s370_s2 + $0x30] sm:$0xff] %v281_v21  }
  0x1a   :  { %301 = vst [vmem:[%s370_s2 + $0x38] sm:$0xff] %v286_v22  }

// kernel: _lambda_.8
= control target key start
LH: loop header
LB: loop body
LE: loop exit
PB: predicated region body
PF: predicated region fallthrough
CT: control target
= control target key end

     0   :  { %v642_v16 = vmov 0.0   ;;  %s758_s1 = inlined_call_operand.vmem [shape: bf16[128,128], index: 1, kind: input, shape index: {}]   ;;  %s759_s0 = inlined_call_operand.vmem [shape: bf16[128,128], index: 0, kind: input, shape index: {}]   ;;  %s760_s3 = inlined_call_operand.vmem [shape: f32[8,128], index: 3, kind: output, shape index: {1}]   ;;  %s761_s4 = inlined_call_operand.vmem [shape: f32[8,128], index: 4, kind: output, shape index: {2}]   ;;  %s762_s2 = inlined_call_operand.vmem [shape: bf16[128,128], index: 2, kind: output, shape index: {0}]  }
   0x1   :  { %v626_v0 = vld [vmem:[%s758_s1 + $0x38] sm:$0xff]   ;;  %v627_v1 = vld [vmem:[%s758_s1 + $0x30] sm:$0xff]   ;;  %v628_v2 = vld [vmem:[%s758_s1 + $0x28] sm:$0xff]   ;;  %55 = vst [vmem:[%s760_s3] sm:$0xff] %v642_v16 }
   0x2   :  { %577 = vmatprep.subr.bf16.mxu0 %v626_v0  ;;  %609 = vmatprep.subr.bf16.mxu1 %v626_v0  ;;  %v629_v3 = vld [vmem:[%s758_s1 + $0x20] sm:$0xff]   ;;  %v630_v5 = vld [vmem:[%s758_s1 + $0x18] sm:$0xff]   ;;  %v631_v7 = vld [vmem:[%s758_s1 + $0x10] sm:$0xff]   ;;  %56 = vst [vmem:[%s761_s4] sm:$0xff] %v642_v16 }
   0x3   :  { %578 = vmatpush3.bf16.msra.mxu0 %v626_v0  ;;  %617 = vmatpush3.bf16.msra.mxu1 %v626_v0  ;;  %v634_v4 = vld [vmem:[%s759_s0] sm:$0xff]   ;;  %v632_v8 = vld [vmem:[%s758_s1 + $0x8] sm:$0xff]   ;;  %v636_v12 = vld [vmem:[%s759_s0 + $0x10] sm:$0xff]  }
   0x4   :  { %579 = vmatprep.subr.bf16.mxu0 %v627_v1  ;;  %610 = vmatprep.subr.bf16.mxu1 %v627_v1  ;;  %v638_v6 = vld [vmem:[%s759_s0 + $0x20] sm:$0xff]   ;;  %v635_v10 = vld [vmem:[%s759_s0 + $0x8] sm:$0xff]   ;;  %v640_v13 = vld [vmem:[%s759_s0 + $0x30] sm:$0xff]  }
   0x5   :  { %593 = vmatprep.mubr.bf16.mxu0 %v634_v4  ;;  %601 = vmatprep.mubr.bf16.mxu1 %v638_v6  ;;  %v633_v9 = vld [vmem:[%s758_s1] sm:$0xff]   ;;  %v639_v11 = vld [vmem:[%s759_s0 + $0x28] sm:$0xff]   ;;  %v637_v14 = vld [vmem:[%s759_s0 + $0x18] sm:$0xff]  }
   0x6   :  { %v641_v15 = vld [vmem:[%s759_s0 + $0x38] sm:$0xff]  }
   0x7   :  { %580 = vmatpush3.bf16.msra.mxu0 %v627_v1  ;;  %618 = vmatpush3.bf16.msra.mxu1 %v627_v1 }
   0x8   :  { %581 = vmatprep.subr.bf16.mxu0 %v628_v2  ;;  %611 = vmatprep.subr.bf16.mxu1 %v628_v2 }
   0xb   :  { %582 = vmatpush3.bf16.msra.mxu0 %v628_v2  ;;  %619 = vmatpush3.bf16.msra.mxu1 %v628_v2 }
   0xc   :  { %583 = vmatprep.subr.bf16.mxu0 %v629_v3  ;;  %612 = vmatprep.subr.bf16.mxu1 %v629_v3 }
   0xf   :  { %584 = vmatpush3.bf16.msra.mxu0 %v629_v3  ;;  %620 = vmatpush3.bf16.msra.mxu1 %v629_v3 }
  0x10   :  { %585 = vmatprep.subr.bf16.mxu0 %v630_v5  ;;  %613 = vmatprep.subr.bf16.mxu1 %v630_v5 }
  0x13   :  { %586 = vmatpush3.bf16.msra.mxu0 %v630_v5  ;;  %621 = vmatpush3.bf16.msra.mxu1 %v630_v5 }
  0x14   :  { %587 = vmatprep.subr.bf16.mxu0 %v631_v7  ;;  %614 = vmatprep.subr.bf16.mxu1 %v631_v7 }
  0x17   :  { %588 = vmatpush3.bf16.msra.mxu0 %v631_v7  ;;  %622 = vmatpush3.bf16.msra.mxu1 %v631_v7 }
  0x18   :  { %589 = vmatprep.subr.bf16.mxu0 %v632_v8  ;;  %615 = vmatprep.subr.bf16.mxu1 %v632_v8 }
  0x1b   :  { %590 = vmatpush3.bf16.msra.mxu0 %v632_v8  ;;  %623 = vmatpush3.bf16.msra.mxu1 %v632_v8 }
  0x1c   :  { %591 = vmatprep.subr.bf16.mxu0 %v633_v9  ;;  %616 = vmatprep.subr.bf16.mxu1 %v633_v9 }
  0x1f   :  { %592 = vmatpush3.bf16.msra.mxu0 %v633_v9  ;;  %624 = vmatpush3.bf16.msra.mxu1 %v633_v9 }
  0x22   :  { %594 = vmatmul.mubr.bf16.vlgmr.msra.gmra.mxu0 %v635_v10  ;;  %602 = vmatmul.mubr.bf16.vlgmr.msra.gmra.mxu1 %v639_v11 }
  0x23   :  { %597 = vmatprep.mubr.bf16.mxu0 %v636_v12  ;;  %605 = vmatprep.mubr.bf16.mxu1 %v640_v13 }
  0x2a   :  { %598 = vmatmul.mubr.bf16.gmra.mxu0 %v637_v14  ;;  %606 = vmatmul.mubr.bf16.gmra.mxu1 %v641_v15 }
  0xe2   :  { %v595_v17 = vpop.f32.mrf.mxu0  ;;  %v603_v18 = vpop.f32.mrf.mxu1 }
  0xe3   :  { %v389_v34 = vmul.f32 %v595_v17, %v595_v17  ;;  %v397_v4 = vmul.f32 %v603_v18, %v603_v18 }
  0xe4   :  { %v219_v19 = vpop.f32.mrf.mxu0  ;;  %v251_v20 = vpop.f32.mrf.mxu1 }
  0xe5   :  { %v387_v25 = vmul.f32 %v219_v19, %v219_v19  ;;  %v395_v62 = vmul.f32 %v251_v20, %v251_v20 }
  0xe6   :  { %v596_v21 = vpop.f32.mrf.mxu0  ;;  %v604_v22 = vpop.f32.mrf.mxu1 }
  0xe7   :  { %v522_v23 = vpack.c.bf16 %v596_v21, %v595_v17  ;;  %v542_v24 = vpack.c.bf16 %v604_v22, %v603_v18  ;;  %v390_v39 = vmul.f32 %v596_v21, %v596_v21  ;;  %v398_v7 = vmul.f32 %v604_v22, %v604_v22 }
  0xe8   :  { %v222_v26 = vpop.f32.mrf.mxu0  ;;  %v254_v27 = vpop.f32.mrf.mxu1 }
  0xe9   :  { %554 = vst [vmem:[%s762_s2 + $0x8] sm:$0xff] %v522_v23   ;;  %v517_v28 = vpack.c.bf16 %v222_v26, %v219_v19  ;;  %v363_v29 = vadd.f32 %v222_v26, %v219_v19  ;;  %v388_v30 = vmul.f32 %v222_v26, %v222_v26  ;;  %558 = vst [vmem:[%s762_s2 + $0x28] sm:$0xff] %v542_v24  }
  0xea   :  { %v537_v31 = vpack.c.bf16 %v254_v27, %v251_v20  ;;  %v599_v32 = vpop.f32.mrf.mxu0  ;;  %v607_v33 = vpop.f32.mrf.mxu1  ;;  %v396_v2 = vmul.f32 %v254_v27, %v254_v27 }
  0xeb   :  { %518 = vst [vmem:[%s762_s2] sm:$0xff] %v517_v28   ;;  %v364_v35 = vadd.f32 %v595_v17, %v363_v29  ;;  %v403_v36 = vadd.f32 %v388_v30, %v387_v25  ;;  %v393_v56 = vmul.f32 %v599_v32, %v599_v32  ;;  %v401_v16 = vmul.f32 %v607_v33, %v607_v33 }
  0xec   :  { %557 = vst [vmem:[%s762_s2 + $0x20] sm:$0xff] %v537_v31   ;;  %v235_v37 = vpop.f32.mrf.mxu0  ;;  %v267_v38 = vpop.f32.mrf.mxu1 }
  0xed   :  { %v404_v40 = vadd.f32 %v403_v36, %v389_v34  ;;  %v365_v41 = vadd.f32 %v596_v21, %v364_v35  ;;  %v391_v45 = vmul.f32 %v235_v37, %v235_v37  ;;  %v399_v11 = vmul.f32 %v267_v38, %v267_v38  ;;  %v386_v35 = vld [vmem:[%s761_s4] sm:$0x1] }
  0xee   :  { %v600_v42 = vpop.f32.mrf.mxu0  ;;  %v608_v43 = vpop.f32.mrf.mxu1 }
  0xef   :  { %v366_v44 = vadd.f32 %v365_v41, %v235_v37  ;;  %v405_v46 = vadd.f32 %v404_v40, %v390_v39  ;;  %v532_v47 = vpack.c.bf16 %v600_v42, %v599_v32  ;;  %v552_v49 = vpack.c.bf16 %v608_v43, %v607_v33 }
  0xf0   :  { %v238_v48 = vpop.f32.mrf.mxu0  ;;  %v270_v50 = vpop.f32.mrf.mxu1  ;;  %v394_v59 = vmul.f32 %v600_v42, %v600_v42  ;;  %v402_v21 = vmul.f32 %v608_v43, %v608_v43 }
  0xf1   :  { %v406_v51 = vadd.f32 %v405_v46, %v391_v45  ;;  %556 = vst [vmem:[%s762_s2 + $0x18] sm:$0xff] %v532_v47   ;;  %v527_v52 = vpack.c.bf16 %v238_v48, %v235_v37  ;;  %v367_v53 = vadd.f32 %v366_v44, %v238_v48  ;;  %v392_v54 = vmul.f32 %v238_v48, %v238_v48 }
  0xf2   :  { %560 = vst [vmem:[%s762_s2 + $0x38] sm:$0xff] %v552_v49   ;;  %v547_v55 = vpack.c.bf16 %v270_v50, %v267_v38  ;;  %v400_v15 = vmul.f32 %v270_v50, %v270_v50 }
  0xf3   :  { %555 = vst [vmem:[%s762_s2 + $0x10] sm:$0xff] %v527_v52   ;;  %v368_v57 = vadd.f32 %v599_v32, %v367_v53  ;;  %v407_v58 = vadd.f32 %v406_v51, %v392_v54  ;;  %v362_v32 = vld [vmem:[%s760_s3] sm:$0x1] }
  0xf4   :  { %559 = vst [vmem:[%s762_s2 + $0x30] sm:$0xff] %v547_v55  }
  0xf5   :  { %v369_v60 = vadd.f32 %v600_v42, %v368_v57  ;;  %v408_v61 = vadd.f32 %v407_v58, %v393_v56 }
  0xf7   :  { %v409_v63 = vadd.f32 %v408_v61, %v394_v59  ;;  %v370_v0 = vadd.f32 %v369_v60, %v251_v20 }
  0xf9   :  { %v371_v1 = vadd.f32 %v370_v0, %v254_v27  ;;  %v410_v3 = vadd.f32 %v409_v63, %v395_v62 }
  0xfb   :  { %v372_v5 = vadd.f32 %v603_v18, %v371_v1  ;;  %v411_v6 = vadd.f32 %v410_v3, %v396_v2 }
  0xfd   :  { %v412_v8 = vadd.f32 %v411_v6, %v397_v4  ;;  %v373_v9 = vadd.f32 %v604_v22, %v372_v5 }
  0xff   :  { %v374_v10 = vadd.f32 %v373_v9, %v267_v38  ;;  %v413_v12 = vadd.f32 %v412_v8, %v398_v7 }
 0x101   :  { %v414_v13 = vadd.f32 %v413_v12, %v399_v11  ;;  %v375_v14 = vadd.f32 %v374_v10, %v270_v50 }
 0x103   :  { %v376_v17 = vadd.f32 %v607_v33, %v375_v14  ;;  %v415_v19 = vadd.f32 %v414_v13, %v400_v15 }
 0x105   :  { %v377_v20 = vadd.f32 %v608_v43, %v376_v17  ;;  %v416_v23 = vadd.f32 %v415_v19, %v401_v16 }
 0x107   :  { %v378_v24 = vrot.slane %v377_v20, 4  ;;  %v417_v25 = vadd.f32 %v416_v23, %v402_v21 }
 0x109   :  { %v379_v26 = vadd.f32 %v378_v24, %v377_v20  ;;  %v418_v18 = vrot.slane %v417_v25, 4 }
 0x10b   :  { %v380_v27 = vrot.slane %v379_v26, 2  ;;  %v419_v28 = vadd.f32 %v418_v18, %v417_v25 }
 0x10d   :  { %v381_v29 = vadd.f32 %v380_v27, %v379_v26  ;;  %v420_v22 = vrot.slane %v419_v28, 2 }
 0x10f   :  { %v382_v30 = vrot.slane %v381_v29, 1  ;;  %v421_v31 = vadd.f32 %v420_v22, %v419_v28 }
 0x111   :  { %v383_v34 = vadd.f32 %v382_v30, %v381_v29  ;;  %v422_v33 = vrot.slane %v421_v31, 1 }
 0x113   :  { %v384_v36 = vadd.f32 %v383_v34, %v362_v32  ;;  %v423_v37 = vadd.f32 %v422_v33, %v421_v31 }
 0x115   :  { %385 = vst [vmem:[%s760_s3] sm:$0x1] %v384_v36  ;;  %v424_v38 = vadd.f32 %v423_v37, %v386_v35 }
 0x117   :  { %425 = vst [vmem:[%s761_s4] sm:$0x1] %v424_v38 }

// kernel: _lambda_.15
= control target key start
LH: loop header
LB: loop body
LE: loop exit
PB: predicated region body
PF: predicated region fallthrough
CT: control target
= control target key end

     0   :  { %v47_v0 = vlaneseq  ;;  %s410_s0 = inlined_call_operand.vmem [shape: bf16[128,128], index: 0, kind: input, shape index: {}]   ;;  %s411_s1 = inlined_call_operand.vmem [shape: f32[2,128], index: 1, kind: input, shape index: {}]   ;;  %s412_s2 = inlined_call_operand.vmem [shape: bf16[128,128], index: 2, kind: input, shape index: {}]   ;;  %s413_s3 = inlined_call_operand.vmem [shape: f32[128,128], index: 3, kind: output, shape index: {}]  }
   0x1   :  { %v14_v1 = vld [vmem:[%s411_s1] sm:$0x3]  ;;  %v235_v8 = vld [vmem:[%s410_s0 + $0x8] sm:$0xff]   ;;  %v236_v10 = vld [vmem:[%s410_s0 + $0x10] sm:$0xff]  }
   0x2   :  { %v172_v2 = vld [vmem:[%s410_s0] sm:$0xff]   ;;  %v48_v5 = vshrl.u32 %v47_v0, 7  ;;  %v242_v9 = vld [vmem:[%s412_s2 + $0x8] sm:$0xff]   ;;  %v177_v12 = vunpack.c.l.bf16 %v235_v8  ;;  %v178_v14 = vunpack.c.h.bf16 %v235_v8  ;;  %v243_v15 = vld [vmem:[%s412_s2 + $0x10] sm:$0xff]   ;;  %v181_v21 = vunpack.c.l.bf16 %v236_v10 }
   0x3   :  { %v204_v3 = vld [vmem:[%s412_s2] sm:$0xff]   ;;  %v173_v4 = vunpack.c.l.bf16 %v172_v2  ;;  %v174_v7 = vunpack.c.h.bf16 %v172_v2  ;;  %v209_v13 = vunpack.c.l.bf16 %v242_v9  ;;  %v237_v16 = vld [vmem:[%s410_s0 + $0x18] sm:$0xff]   ;;  %v210_v20 = vunpack.c.h.bf16 %v242_v9  ;;  %v239_v60 = vld [vmem:[%s410_s0 + $0x28] sm:$0xff]  }
   0x4   :  { %v205_v6 = vunpack.c.l.bf16 %v204_v3  ;;  %v206_v11 = vunpack.c.h.bf16 %v204_v3  ;;  %v244_v17 = vld [vmem:[%s412_s2 + $0x18] sm:$0xff]   ;;  %v49_v18 = vsub.s32 0, %v48_v5  ;;  %v69_v19 = vsub.s32 1, %v48_v5  ;;  %v238_v22 = vld [vmem:[%s410_s0 + $0x20] sm:$0xff]   ;;  %v240_v2 = vld [vmem:[%s410_s0 + $0x30] sm:$0xff]  }
   0x5   :  { %v302_v23 = vld [vmem:[%s412_s2 + $0x20] sm:$0xff]   ;;  %v213_v24 = vunpack.c.l.bf16 %v243_v15  ;;  %v182_v25 = vunpack.c.h.bf16 %v236_v10  ;;  %v214_v26 = vunpack.c.h.bf16 %v243_v15  ;;  %v185_v27 = vunpack.c.l.bf16 %v237_v16 }
   0x6   :  { %v304_v28 = vrot.slane %v14_v1, %v49_v18  ;;  %v306_v29 = vrot.slane %v14_v1, %v69_v19  ;;  %v217_v30 = vunpack.c.l.bf16 %v244_v17  ;;  %v186_v31 = vunpack.c.h.bf16 %v237_v16  ;;  %v246_v1 = vld [vmem:[%s412_s2 + $0x28] sm:$0xff]   ;;  %v241_v16 = vld [vmem:[%s410_s0 + $0x38] sm:$0xff]  }
   0x7   :  { %v218_v32 = vunpack.c.h.bf16 %v244_v17  ;;  %v189_v33 = vunpack.c.l.bf16 %v238_v22  ;;  %v221_v34 = vunpack.c.l.bf16 %v302_v23  ;;  %v190_v35 = vunpack.c.h.bf16 %v238_v22 }
   0x8   :  { %v51_v36 = vmul.f32 %v173_v4, %v304_v28  ;;  %v52_v37 = vmul.f32 %v174_v7, %v304_v28  ;;  %v53_v38 = vmul.f32 %v177_v12, %v304_v28  ;;  %v54_v39 = vmul.f32 %v178_v14, %v304_v28  ;;  %v247_v7 = vld [vmem:[%s412_s2 + $0x30] sm:$0xff]  }
   0x9   :  { %v55_v40 = vmul.f32 %v181_v21, %v304_v28  ;;  %v56_v41 = vmul.f32 %v182_v25, %v304_v28  ;;  %v57_v42 = vmul.f32 %v185_v27, %v304_v28  ;;  %v58_v43 = vmul.f32 %v186_v31, %v304_v28  ;;  %v248_v21 = vld [vmem:[%s412_s2 + $0x38] sm:$0xff]  }
   0xa   :  { %v71_v44 = vadd.f32 %v306_v29, %v51_v36  ;;  %v72_v45 = vadd.f32 %v306_v29, %v52_v37  ;;  %v73_v46 = vadd.f32 %v306_v29, %v53_v38  ;;  %v74_v47 = vadd.f32 %v306_v29, %v54_v39 }
   0xb   :  { %v75_v48 = vadd.f32 %v306_v29, %v55_v40  ;;  %v76_v49 = vadd.f32 %v306_v29, %v56_v41  ;;  %v77_v50 = vadd.f32 %v306_v29, %v57_v42  ;;  %v78_v51 = vadd.f32 %v306_v29, %v58_v43 }
   0xc   :  { %v119_v52 = vadd.f32 %v205_v6, %v71_v44  ;;  %v120_v53 = vadd.f32 %v206_v11, %v72_v45  ;;  %v121_v54 = vadd.f32 %v209_v13, %v73_v46  ;;  %v122_v55 = vadd.f32 %v210_v20, %v74_v47 }
   0xd   :  { %v123_v56 = vadd.f32 %v213_v24, %v75_v48  ;;  %v124_v57 = vadd.f32 %v214_v26, %v76_v49  ;;  %v125_v58 = vadd.f32 %v217_v30, %v77_v50  ;;  %v126_v59 = vadd.f32 %v218_v32, %v78_v51 }
   0xe   :  { %v135_v61 = vmax.f32 %v119_v52, 0.0  ;;  %v136_v62 = vmax.f32 %v120_v53, 0.0  ;;  %v137_v63 = vmax.f32 %v121_v54, 0.0  ;;  %v138_v0 = vmax.f32 %v122_v55, 0.0 }
   0xf   :  { %v139_v3 = vmax.f32 %v123_v56, 0.0  ;;  %v140_v4 = vmax.f32 %v124_v57, 0.0  ;;  %v141_v5 = vmax.f32 %v125_v58, 0.0  ;;  %v142_v6 = vmax.f32 %v126_v59, 0.0 }
  0x10   :  { %151 = vst [vmem:[%s413_s3] sm:$0xff] %v135_v61  ;;  %152 = vst [vmem:[%s413_s3 + $0x8] sm:$0xff] %v136_v62  ;;  %v59_v8 = vmul.f32 %v189_v33, %v304_v28  ;;  %v60_v9 = vmul.f32 %v190_v35, %v304_v28  ;;  %v222_v10 = vunpack.c.h.bf16 %v302_v23  ;;  %v193_v11 = vunpack.c.l.bf16 %v239_v60 }
  0x11   :  { %153 = vst [vmem:[%s413_s3 + $0x10] sm:$0xff] %v137_v63  ;;  %154 = vst [vmem:[%s413_s3 + $0x18] sm:$0xff] %v138_v0  ;;  %v225_v12 = vunpack.c.l.bf16 %v246_v1  ;;  %v194_v13 = vunpack.c.h.bf16 %v239_v60  ;;  %v226_v14 = vunpack.c.h.bf16 %v246_v1  ;;  %v197_v15 = vunpack.c.l.bf16 %v240_v2 }
  0x12   :  { %155 = vst [vmem:[%s413_s3 + $0x20] sm:$0xff] %v139_v3  ;;  %156 = vst [vmem:[%s413_s3 + $0x28] sm:$0xff] %v140_v4  ;;  %v79_v17 = vadd.f32 %v306_v29, %v59_v8  ;;  %v80_v18 = vadd.f32 %v306_v29, %v60_v9  ;;  %v61_v19 = vmul.f32 %v193_v11, %v304_v28  ;;  %v229_v20 = vunpack.c.l.bf16 %v247_v7 }
  0x13   :  { %157 = vst [vmem:[%s413_s3 + $0x30] sm:$0xff] %v141_v5  ;;  %158 = vst [vmem:[%s413_s3 + $0x38] sm:$0xff] %v142_v6  ;;  %v62_v22 = vmul.f32 %v194_v13, %v304_v28  ;;  %v63_v24 = vmul.f32 %v197_v15, %v304_v28  ;;  %v198_v25 = vunpack.c.h.bf16 %v240_v2  ;;  %v230_v26 = vunpack.c.h.bf16 %v247_v7 }
  0x14   :  { %v127_v27 = vadd.f32 %v221_v34, %v79_v17  ;;  %v128_v30 = vadd.f32 %v222_v10, %v80_v18  ;;  %v81_v31 = vadd.f32 %v306_v29, %v61_v19  ;;  %v201_v32 = vunpack.c.l.bf16 %v241_v16 }
  0x15   :  { %v82_v33 = vadd.f32 %v306_v29, %v62_v22  ;;  %v83_v35 = vadd.f32 %v306_v29, %v63_v24  ;;  %v64_v36 = vmul.f32 %v198_v25, %v304_v28  ;;  %v233_v37 = vunpack.c.l.bf16 %v248_v21 }
  0x16   :  { %v143_v38 = vmax.f32 %v127_v27, 0.0  ;;  %v144_v39 = vmax.f32 %v128_v30, 0.0  ;;  %v129_v40 = vadd.f32 %v225_v12, %v81_v31  ;;  %v65_v41 = vmul.f32 %v201_v32, %v304_v28 }
  0x17   :  { %v130_v42 = vadd.f32 %v226_v14, %v82_v33  ;;  %v131_v43 = vadd.f32 %v229_v20, %v83_v35  ;;  %v84_v23 = vadd.f32 %v306_v29, %v64_v36  ;;  %v202_v34 = vunpack.c.h.bf16 %v241_v16 }
  0x18   :  { %159 = vst [vmem:[%s413_s3 + $0x40] sm:$0xff] %v143_v38  ;;  %160 = vst [vmem:[%s413_s3 + $0x48] sm:$0xff] %v144_v39  ;;  %v145_v44 = vmax.f32 %v129_v40, 0.0  ;;  %v85_v45 = vadd.f32 %v306_v29, %v65_v41  ;;  %v234_v46 = vunpack.c.h.bf16 %v248_v21 }
  0x19   :  { %v146_v47 = vmax.f32 %v130_v42, 0.0  ;;  %v147_v48 = vmax.f32 %v131_v43, 0.0  ;;  %v132_v49 = vadd.f32 %v230_v26, %v84_v23  ;;  %v66_v50 = vmul.f32 %v202_v34, %v304_v28 }
  0x1a   :  { %161 = vst [vmem:[%s413_s3 + $0x50] sm:$0xff] %v145_v44  ;;  %v133_v51 = vadd.f32 %v233_v37, %v85_v45 }
  0x1b   :  { %162 = vst [vmem:[%s413_s3 + $0x58] sm:$0xff] %v146_v47  ;;  %163 = vst [vmem:[%s413_s3 + $0x60] sm:$0xff] %v147_v48  ;;  %v148_v52 = vmax.f32 %v132_v49, 0.0  ;;  %v86_v53 = vadd.f32 %v306_v29, %v66_v50 }
  0x1c   :  { %v149_v54 = vmax.f32 %v133_v51, 0.0 }
  0x1d   :  { %164 = vst [vmem:[%s413_s3 + $0x68] sm:$0xff] %v148_v52  ;;  %v134_v28 = vadd.f32 %v234_v46, %v86_v53 }
  0x1e   :  { %165 = vst [vmem:[%s413_s3 + $0x70] sm:$0xff] %v149_v54 }
  0x1f   :  { %v150_v55 = vmax.f32 %v134_v28, 0.0 }
  0x21   :  { %166 = vst [vmem:[%s413_s3 + $0x78] sm:$0xff] %v150_v55 }

// kernel: _lambda_.11
= control target key start
LH: loop header
LB: loop body
LE: loop exit
PB: predicated region body
PF: predicated region fallthrough
CT: control target
= control target key end

     0   :  { %v47_v0 = vlaneseq  ;;  %s603_s0 = inlined_call_operand.vmem [shape: bf16[128,128], index: 0, kind: input, shape index: {}]   ;;  %s604_s1 = inlined_call_operand.vmem [shape: f32[4,128], index: 1, kind: input, shape index: {}]   ;;  %s605_s2 = inlined_call_operand.vmem [shape: bf16[128,128], index: 2, kind: input, shape index: {}]   ;;  %s606_s3 = inlined_call_operand.vmem [shape: bf16[128,128], index: 3, kind: output, shape index: {}]  }
   0x1   :  { %v308_v1 = vld [vmem:[%s603_s0] sm:$0xff]   ;;  %v411_v7 = vld [vmem:[%s603_s0 + $0x8] sm:$0xff]   ;;  %v412_v9 = vld [vmem:[%s603_s0 + $0x10] sm:$0xff]  }
   0x2   :  { %v340_v2 = vld [vmem:[%s605_s2] sm:$0xff]   ;;  %v309_v3 = vunpack.c.l.bf16 %v308_v1  ;;  %v310_v4 = vunpack.c.h.bf16 %v308_v1  ;;  %v48_v5 = vshrl.u32 %v47_v0, 7  ;;  %v418_v8 = vld [vmem:[%s605_s2 + $0x8] sm:$0xff]   ;;  %v313_v12 = vunpack.c.l.bf16 %v411_v7  ;;  %v419_v15 = vld [vmem:[%s605_s2 + $0x10] sm:$0xff]  }
   0x3   :  { %v341_v6 = vunpack.c.l.bf16 %v340_v2  ;;  %v14_v10 = vld [vmem:[%s604_s1] sm:$0xf]  ;;  %v342_v11 = vunpack.c.h.bf16 %v340_v2  ;;  %v314_v13 = vunpack.c.h.bf16 %v411_v7  ;;  %v345_v14 = vunpack.c.l.bf16 %v418_v8  ;;  %v413_v20 = vld [vmem:[%s603_s0 + $0x18] sm:$0xff]  }
   0x4   :  { %v49_v16 = vsub.s32 0, %v48_v5  ;;  %v69_v17 = vsub.s32 1, %v48_v5  ;;  %v121_v18 = vsub.s32 2, %v48_v5  ;;  %v157_v19 = vsub.s32 3, %v48_v5  ;;  %v479_v21 = vld [vmem:[%s605_s2 + $0x18] sm:$0xff]   ;;  %v414_v2 = vld [vmem:[%s603_s0 + $0x20] sm:$0xff]  }
   0x5   :  { %v346_v22 = vunpack.c.h.bf16 %v418_v8  ;;  %v317_v23 = vunpack.c.l.bf16 %v412_v9  ;;  %v318_v24 = vunpack.c.h.bf16 %v412_v9  ;;  %v349_v25 = vunpack.c.l.bf16 %v419_v15 }
   0x6   :  { %v481_v26 = vrot.slane %v14_v10, %v49_v16  ;;  %v483_v27 = vrot.slane %v14_v10, %v69_v17  ;;  %v485_v28 = vrot.slane %v14_v10, %v121_v18  ;;  %v487_v29 = vrot.slane %v14_v10, %v157_v19  ;;  %v415_v16 = vld [vmem:[%s603_s0 + $0x28] sm:$0xff]  }
   0x7   :  { %v350_v30 = vunpack.c.h.bf16 %v419_v15  ;;  %v321_v31 = vunpack.c.l.bf16 %v413_v20  ;;  %v322_v32 = vunpack.c.h.bf16 %v413_v20  ;;  %v353_v33 = vunpack.c.l.bf16 %v479_v21 }
   0x8   :  { %v51_v34 = vmul.f32 %v309_v3, %v481_v26  ;;  %v52_v35 = vmul.f32 %v310_v4, %v481_v26  ;;  %v123_v36 = vmul.f32 %v341_v6, %v485_v28  ;;  %v124_v37 = vmul.f32 %v342_v11, %v485_v28  ;;  %v421_v11 = vld [vmem:[%s605_s2 + $0x20] sm:$0xff]  }
   0x9   :  { %v53_v38 = vmul.f32 %v313_v12, %v481_v26  ;;  %v54_v39 = vmul.f32 %v314_v13, %v481_v26  ;;  %v125_v40 = vmul.f32 %v345_v14, %v485_v28  ;;  %v126_v41 = vmul.f32 %v346_v22, %v485_v28 }
   0xa   :  { %v71_v42 = vadd.f32 %v483_v27, %v51_v34  ;;  %v72_v43 = vadd.f32 %v483_v27, %v52_v35  ;;  %v55_v44 = vmul.f32 %v317_v23, %v481_v26  ;;  %v56_v45 = vmul.f32 %v318_v24, %v481_v26 }
   0xb   :  { %v73_v46 = vadd.f32 %v483_v27, %v53_v38  ;;  %v74_v47 = vadd.f32 %v483_v27, %v54_v39  ;;  %v127_v48 = vmul.f32 %v349_v25, %v485_v28  ;;  %v128_v49 = vmul.f32 %v350_v30, %v485_v28  ;;  %v416_v38 = vld [vmem:[%s603_s0 + $0x30] sm:$0xff]  }
   0xc   :  { %v139_v50 = vadd.f32 %v123_v36, %v71_v42  ;;  %v140_v51 = vadd.f32 %v124_v37, %v72_v43  ;;  %v75_v52 = vadd.f32 %v483_v27, %v55_v44  ;;  %v76_v53 = vadd.f32 %v483_v27, %v56_v45 }
   0xd   :  { %v141_v54 = vadd.f32 %v125_v40, %v73_v46  ;;  %v142_v55 = vadd.f32 %v126_v41, %v74_v47  ;;  %v57_v56 = vmul.f32 %v321_v31, %v481_v26  ;;  %v58_v57 = vmul.f32 %v322_v32, %v481_v26 }
   0xe   :  { %v159_v58 = vadd.f32 %v487_v29, %v139_v50  ;;  %v160_v59 = vadd.f32 %v487_v29, %v140_v51  ;;  %v143_v60 = vadd.f32 %v127_v48, %v75_v52  ;;  %v144_v61 = vadd.f32 %v128_v49, %v76_v53  ;;  %v423_v51 = vld [vmem:[%s605_s2 + $0x30] sm:$0xff]  }
   0xf   :  { %v161_v62 = vadd.f32 %v487_v29, %v141_v54  ;;  %v162_v63 = vadd.f32 %v487_v29, %v142_v55  ;;  %v77_v0 = vadd.f32 %v483_v27, %v57_v56  ;;  %v78_v1 = vadd.f32 %v483_v27, %v58_v57 }
  0x10   :  { %v175_v3 = vmax.f32 %v159_v58, 0.0  ;;  %v176_v4 = vmax.f32 %v160_v59, 0.0  ;;  %v163_v5 = vadd.f32 %v487_v29, %v143_v60  ;;  %v164_v6 = vadd.f32 %v487_v29, %v144_v61  ;;  %v417_v60 = vld [vmem:[%s603_s0 + $0x38] sm:$0xff]  }
  0x11   :  { %v177_v7 = vmax.f32 %v161_v62, 0.0  ;;  %v178_v8 = vmax.f32 %v162_v63, 0.0  ;;  %v354_v9 = vunpack.c.h.bf16 %v479_v21  ;;  %v129_v10 = vmul.f32 %v353_v33, %v485_v28  ;;  %v422_v33 = vld [vmem:[%s605_s2 + $0x28] sm:$0xff]  }
  0x12   :  { %v374_v12 = vpack.c.bf16 %v176_v4, %v175_v3  ;;  %v179_v13 = vmax.f32 %v163_v5, 0.0  ;;  %v180_v14 = vmax.f32 %v164_v6, 0.0  ;;  %v325_v15 = vunpack.c.l.bf16 %v414_v2 }
  0x13   :  { %v379_v17 = vpack.c.bf16 %v178_v8, %v177_v7  ;;  %v130_v18 = vmul.f32 %v354_v9, %v485_v28  ;;  %v145_v19 = vadd.f32 %v129_v10, %v77_v0  ;;  %v326_v20 = vunpack.c.h.bf16 %v414_v2  ;;  %v424_v9 = vld [vmem:[%s605_s2 + $0x38] sm:$0xff]  }
  0x14   :  { %375 = vst [vmem:[%s606_s3] sm:$0xff] %v374_v12   ;;  %v384_v21 = vpack.c.bf16 %v180_v14, %v179_v13  ;;  %v59_v22 = vmul.f32 %v325_v15, %v481_v26  ;;  %v357_v23 = vunpack.c.l.bf16 %v421_v11  ;;  %v358_v24 = vunpack.c.h.bf16 %v421_v11 }
  0x15   :  { %425 = vst [vmem:[%s606_s3 + $0x8] sm:$0xff] %v379_v17   ;;  %v146_v25 = vadd.f32 %v130_v18, %v78_v1  ;;  %v165_v30 = vadd.f32 %v487_v29, %v145_v19  ;;  %v60_v31 = vmul.f32 %v326_v20, %v481_v26  ;;  %v329_v32 = vunpack.c.l.bf16 %v415_v16 }
  0x16   :  { %426 = vst [vmem:[%s606_s3 + $0x10] sm:$0xff] %v384_v21   ;;  %v79_v34 = vadd.f32 %v483_v27, %v59_v22  ;;  %v131_v35 = vmul.f32 %v357_v23, %v485_v28  ;;  %v132_v36 = vmul.f32 %v358_v24, %v485_v28  ;;  %v330_v37 = vunpack.c.h.bf16 %v415_v16 }
  0x17   :  { %v166_v39 = vadd.f32 %v487_v29, %v146_v25  ;;  %v181_v40 = vmax.f32 %v165_v30, 0.0  ;;  %v80_v41 = vadd.f32 %v483_v27, %v60_v31  ;;  %v61_v42 = vmul.f32 %v329_v32, %v481_v26 }
  0x18   :  { %v147_v43 = vadd.f32 %v131_v35, %v79_v34  ;;  %v62_v44 = vmul.f32 %v330_v37, %v481_v26  ;;  %v361_v45 = vunpack.c.l.bf16 %v422_v33  ;;  %v362_v46 = vunpack.c.h.bf16 %v422_v33 }
  0x19   :  { %v182_v47 = vmax.f32 %v166_v39, 0.0  ;;  %v148_v48 = vadd.f32 %v132_v36, %v80_v41  ;;  %v81_v49 = vadd.f32 %v483_v27, %v61_v42  ;;  %v333_v50 = vunpack.c.l.bf16 %v416_v38 }
  0x1a   :  { %v167_v52 = vadd.f32 %v487_v29, %v147_v43  ;;  %v82_v53 = vadd.f32 %v483_v27, %v62_v44  ;;  %v133_v54 = vmul.f32 %v361_v45, %v485_v28  ;;  %v134_v55 = vmul.f32 %v362_v46, %v485_v28 }
  0x1b   :  { %v389_v56 = vpack.c.bf16 %v182_v47, %v181_v40  ;;  %v168_v57 = vadd.f32 %v487_v29, %v148_v48  ;;  %v334_v58 = vunpack.c.h.bf16 %v416_v38  ;;  %v63_v59 = vmul.f32 %v333_v50, %v481_v26 }
  0x1c   :  { %v183_v61 = vmax.f32 %v167_v52, 0.0  ;;  %v149_v62 = vadd.f32 %v133_v54, %v81_v49  ;;  %v150_v63 = vadd.f32 %v134_v55, %v82_v53  ;;  %v365_v0 = vunpack.c.l.bf16 %v423_v51 }
  0x1d   :  { %427 = vst [vmem:[%s606_s3 + $0x18] sm:$0xff] %v389_v56   ;;  %v184_v1 = vmax.f32 %v168_v57, 0.0  ;;  %v64_v2 = vmul.f32 %v334_v58, %v481_v26  ;;  %v83_v3 = vadd.f32 %v483_v27, %v63_v59  ;;  %v366_v4 = vunpack.c.h.bf16 %v423_v51 }
  0x1e   :  { %v169_v5 = vadd.f32 %v487_v29, %v149_v62  ;;  %v170_v6 = vadd.f32 %v487_v29, %v150_v63  ;;  %v135_v7 = vmul.f32 %v365_v0, %v485_v28  ;;  %v337_v8 = vunpack.c.l.bf16 %v417_v60 }
  0x1f   :  { %v394_v10 = vpack.c.bf16 %v184_v1, %v183_v61  ;;  %v84_v11 = vadd.f32 %v483_v27, %v64_v2  ;;  %v136_v12 = vmul.f32 %v366_v4, %v485_v28  ;;  %v338_v13 = vunpack.c.h.bf16 %v417_v60 }
  0x20   :  { %v185_v14 = vmax.f32 %v169_v5, 0.0  ;;  %v186_v15 = vmax.f32 %v170_v6, 0.0  ;;  %v151_v16 = vadd.f32 %v135_v7, %v83_v3  ;;  %v65_v17 = vmul.f32 %v337_v8, %v481_v26 }
  0x21   :  { %428 = vst [vmem:[%s606_s3 + $0x20] sm:$0xff] %v394_v10   ;;  %v152_v18 = vadd.f32 %v136_v12, %v84_v11  ;;  %v66_v19 = vmul.f32 %v338_v13, %v481_v26  ;;  %v369_v20 = vunpack.c.l.bf16 %v424_v9  ;;  %v370_v21 = vunpack.c.h.bf16 %v424_v9 }
  0x22   :  { %v399_v22 = vpack.c.bf16 %v186_v15, %v185_v14  ;;  %v171_v23 = vadd.f32 %v487_v29, %v151_v16  ;;  %v85_v24 = vadd.f32 %v483_v27, %v65_v17 }
  0x23   :  { %v172_v25 = vadd.f32 %v487_v29, %v152_v18  ;;  %v86_v30 = vadd.f32 %v483_v27, %v66_v19  ;;  %v137_v31 = vmul.f32 %v369_v20, %v485_v28  ;;  %v138_v32 = vmul.f32 %v370_v21, %v485_v28 }
  0x24   :  { %429 = vst [vmem:[%s606_s3 + $0x28] sm:$0xff] %v399_v22   ;;  %v187_v26 = vmax.f32 %v171_v23, 0.0 }
  0x25   :  { %v188_v33 = vmax.f32 %v172_v25, 0.0  ;;  %v153_v34 = vadd.f32 %v137_v31, %v85_v24  ;;  %v154_v35 = vadd.f32 %v138_v32, %v86_v30 }
  0x27   :  { %v404_v36 = vpack.c.bf16 %v188_v33, %v187_v26  ;;  %v173_v37 = vadd.f32 %v487_v29, %v153_v34  ;;  %v174_v38 = vadd.f32 %v487_v29, %v154_v35 }
  0x29   :  { %430 = vst [vmem:[%s606_s3 + $0x30] sm:$0xff] %v404_v36   ;;  %v189_v27 = vmax.f32 %v173_v37, 0.0  ;;  %v190_v39 = vmax.f32 %v174_v38, 0.0 }
  0x2b   :  { %v409_v28 = vpack.c.bf16 %v190_v39, %v189_v27 }
  0x2d   :  { %431 = vst [vmem:[%s606_s3 + $0x38] sm:$0xff] %v409_v28  }

// kernel: _lambda_.10
= control target key start
LH: loop header
LB: loop body
LE: loop exit
PB: predicated region body
PF: predicated region fallthrough
CT: control target
= control target key end

     0   :  { %v1241_v32 = vmov 0.0   ;;  %s1472_s1 = inlined_call_operand.vmem [shape: bf16[128,128], index: 1, kind: input, shape index: {}]   ;;  %s1473_s3 = inlined_call_operand.vmem [shape: bf16[128,128], index: 3, kind: input, shape index: {}]   ;;  %s1474_s0 = inlined_call_operand.vmem [shape: bf16[128,128], index: 0, kind: input, shape index: {}]   ;;  %s1475_s2 = inlined_call_operand.vmem [shape: bf16[128,128], index: 2, kind: input, shape index: {}]   ;;  %s1476_s6 = inlined_call_operand.vmem [shape: f32[8,128], index: 6, kind: output, shape index: {2}]   ;;  %s1477_s7 = inlined_call_operand.vmem [shape: f32[8,128], index: 7, kind: output, shape index: {3}]   ;;  %s1478_s8 = inlined_call_operand.vmem [shape: f32[8,128], index: 8, kind: output, shape index: {4}]   ;;  %s1479_s9 = inlined_call_operand.vmem [shape: f32[8,128], index: 9, kind: output, shape index: {5}]   ;;  %s1480_s4 = inlined_call_operand.vmem [shape: bf16[128,128], index: 4, kind: output, shape index: {0}]   ;;  %s1481_s5 = inlined_call_operand.vmem [shape: bf16[128,128], index: 5, kind: output, shape index: {1}]  }
   0x1   :  { %v1209_v0 = vld [vmem:[%s1472_s1 + $0x38] sm:$0xff]   ;;  %v1211_v2 = vld [vmem:[%s1472_s1 + $0x30] sm:$0xff]   ;;  %v1213_v4 = vld [vmem:[%s1472_s1 + $0x28] sm:$0xff]   ;;  %100 = vst [vmem:[%s1476_s6] sm:$0xff] %v1241_v32 }
   0x2   :  { %v1210_v1 = vld [vmem:[%s1473_s3 + $0x38] sm:$0xff]   ;;  %1144 = vmatprep.subr.bf16.mxu0 %v1209_v0  ;;  %v1212_v3 = vld [vmem:[%s1473_s3 + $0x30] sm:$0xff]   ;;  %v1214_v5 = vld [vmem:[%s1473_s3 + $0x28] sm:$0xff]   ;;  %101 = vst [vmem:[%s1477_s7] sm:$0xff] %v1241_v32 }
   0x3   :  { %1176 = vmatprep.subr.bf16.mxu1 %v1210_v1  ;;  %1145 = vmatpush3.bf16.msra.mxu0 %v1209_v0  ;;  %v1215_v6 = vld [vmem:[%s1472_s1 + $0x20] sm:$0xff]   ;;  %v1217_v8 = vld [vmem:[%s1472_s1 + $0x18] sm:$0xff]   ;;  %v1219_v10 = vld [vmem:[%s1472_s1 + $0x10] sm:$0xff]   ;;  %102 = vst [vmem:[%s1478_s8] sm:$0xff] %v1241_v32 }
   0x4   :  { %1177 = vmatpush3.bf16.msra.mxu1 %v1210_v1  ;;  %1146 = vmatprep.subr.bf16.mxu0 %v1211_v2  ;;  %v1216_v7 = vld [vmem:[%s1473_s3 + $0x20] sm:$0xff]   ;;  %v1218_v9 = vld [vmem:[%s1473_s3 + $0x18] sm:$0xff]   ;;  %v1220_v11 = vld [vmem:[%s1473_s3 + $0x10] sm:$0xff]   ;;  %103 = vst [vmem:[%s1479_s9] sm:$0xff] %v1241_v32 }
   0x5   :  { %1178 = vmatprep.subr.bf16.mxu1 %v1212_v3  ;;  %v1225_v12 = vld [vmem:[%s1474_s0] sm:$0xff]   ;;  %v1221_v14 = vld [vmem:[%s1472_s1 + $0x8] sm:$0xff]   ;;  %v1229_v20 = vld [vmem:[%s1474_s0 + $0x10] sm:$0xff]  }
   0x6   :  { %v1226_v13 = vld [vmem:[%s1475_s2] sm:$0xff]   ;;  %1160 = vmatprep.mubr.bf16.mxu0 %v1225_v12  ;;  %v1222_v15 = vld [vmem:[%s1473_s3 + $0x8] sm:$0xff]   ;;  %v1230_v21 = vld [vmem:[%s1475_s2 + $0x10] sm:$0xff]  }
   0x7   :  { %1147 = vmatpush3.bf16.msra.mxu0 %v1211_v2  ;;  %1192 = vmatprep.mubr.bf16.mxu1 %v1226_v13  ;;  %v1223_v16 = vld [vmem:[%s1472_s1] sm:$0xff]   ;;  %v1227_v18 = vld [vmem:[%s1474_s0 + $0x8] sm:$0xff]   ;;  %v1231_v22 = vld [vmem:[%s1474_s0 + $0x18] sm:$0xff]  }
   0x8   :  { %1179 = vmatpush3.bf16.msra.mxu1 %v1212_v3  ;;  %1148 = vmatprep.subr.bf16.mxu0 %v1213_v4  ;;  %v1224_v17 = vld [vmem:[%s1473_s3] sm:$0xff]   ;;  %v1228_v19 = vld [vmem:[%s1475_s2 + $0x8] sm:$0xff]   ;;  %v1232_v23 = vld [vmem:[%s1475_s2 + $0x18] sm:$0xff]  }
   0x9   :  { %1180 = vmatprep.subr.bf16.mxu1 %v1214_v5  ;;  %v1233_v24 = vld [vmem:[%s1474_s0 + $0x20] sm:$0xff]   ;;  %v1235_v26 = vld [vmem:[%s1474_s0 + $0x28] sm:$0xff]   ;;  %v1237_v28 = vld [vmem:[%s1474_s0 + $0x30] sm:$0xff]  }
   0xa   :  { %v1234_v25 = vld [vmem:[%s1475_s2 + $0x20] sm:$0xff]   ;;  %v1236_v27 = vld [vmem:[%s1475_s2 + $0x28] sm:$0xff]   ;;  %v1238_v29 = vld [vmem:[%s1475_s2 + $0x30] sm:$0xff]  }
   0xb   :  { %1149 = vmatpush3.bf16.msra.mxu0 %v1213_v4  ;;  %v1239_v30 = vld [vmem:[%s1474_s0 + $0x38] sm:$0xff]  }
   0xc   :  { %1181 = vmatpush3.bf16.msra.mxu1 %v1214_v5  ;;  %1150 = vmatprep.subr.bf16.mxu0 %v1215_v6  ;;  %v1240_v31 = vld [vmem:[%s1475_s2 + $0x38] sm:$0xff]  }
   0xd   :  { %1182 = vmatprep.subr.bf16.mxu1 %v1216_v7 }
   0xf   :  { %1151 = vmatpush3.bf16.msra.mxu0 %v1215_v6 }
  0x10   :  { %1183 = vmatpush3.bf16.msra.mxu1 %v1216_v7  ;;  %1152 = vmatprep.subr.bf16.mxu0 %v1217_v8 }
  0x11   :  { %1184 = vmatprep.subr.bf16.mxu1 %v1218_v9 }
  0x13   :  { %1153 = vmatpush3.bf16.msra.mxu0 %v1217_v8 }
  0x14   :  { %1185 = vmatpush3.bf16.msra.mxu1 %v1218_v9  ;;  %1154 = vmatprep.subr.bf16.mxu0 %v1219_v10 }
  0x15   :  { %1186 = vmatprep.subr.bf16.mxu1 %v1220_v11 }
  0x17   :  { %1155 = vmatpush3.bf16.msra.mxu0 %v1219_v10 }
  0x18   :  { %1187 = vmatpush3.bf16.msra.mxu1 %v1220_v11  ;;  %1156 = vmatprep.subr.bf16.mxu0 %v1221_v14 }
  0x19   :  { %1188 = vmatprep.subr.bf16.mxu1 %v1222_v15 }
  0x1b   :  { %1157 = vmatpush3.bf16.msra.mxu0 %v1221_v14 }
  0x1c   :  { %1189 = vmatpush3.bf16.msra.mxu1 %v1222_v15  ;;  %1158 = vmatprep.subr.bf16.mxu0 %v1223_v16 }
  0x1d   :  { %1190 = vmatprep.subr.bf16.mxu1 %v1224_v17 }
  0x1f   :  { %1159 = vmatpush3.bf16.msra.mxu0 %v1223_v16 }
  0x20   :  { %1191 = vmatpush3.bf16.msra.mxu1 %v1224_v17 }
  0x22   :  { %1161 = vmatmul.mubr.bf16.vlgmr.msra.gmra.mxu0 %v1227_v18 }
  0x23   :  { %1193 = vmatmul.mubr.bf16.vlgmr.msra.gmra.mxu1 %v1228_v19  ;;  %1164 = vmatprep.mubr.bf16.mxu0 %v1229_v20 }
  0x24   :  { %1196 = vmatprep.mubr.bf16.mxu1 %v1230_v21 }
  0x2a   :  { %1165 = vmatmul.mubr.bf16.gmra.mxu0 %v1231_v22 }
  0x2b   :  { %1197 = vmatmul.mubr.bf16.gmra.mxu1 %v1232_v23  ;;  %1168 = vmatprep.mubr.bf16.mxu0 %v1233_v24 }
  0x2c   :  { %1200 = vmatprep.mubr.bf16.mxu1 %v1234_v25 }
  0x32   :  { %1169 = vmatmul.mubr.bf16.gmra.mxu0 %v1235_v26 }
  0x33   :  { %1201 = vmatmul.mubr.bf16.gmra.mxu1 %v1236_v27  ;;  %1172 = vmatprep.mubr.bf16.mxu0 %v1237_v28 }
  0x34   :  { %1204 = vmatprep.mubr.bf16.mxu1 %v1238_v29 }
  0x3a   :  { %1173 = vmatmul.mubr.bf16.gmra.mxu0 %v1239_v30 }
  0x3b   :  { %1205 = vmatmul.mubr.bf16.gmra.mxu1 %v1240_v31 }
  0xe2   :  { %v1162_v33 = vpop.f32.mrf.mxu0 }
  0xe3   :  { %v1194_v34 = vpop.f32.mrf.mxu1  ;;  %v741_v52 = vmul.f32 %v1162_v33, %v1162_v33 }
  0xe4   :  { %v266_v35 = vpop.f32.mrf.mxu0  ;;  %v805_v56 = vmul.f32 %v1194_v34, %v1194_v34 }
  0xe5   :  { %v491_v36 = vpop.f32.mrf.mxu1  ;;  %v739_v42 = vmul.f32 %v266_v35, %v266_v35 }
  0xe6   :  { %v1163_v37 = vpop.f32.mrf.mxu0  ;;  %v803_v47 = vmul.f32 %v491_v36, %v491_v36 }
  0xe7   :  { %v1026_v38 = vpack.c.bf16 %v1163_v37, %v1162_v33  ;;  %v1195_v39 = vpop.f32.mrf.mxu1  ;;  %v742_v60 = vmul.f32 %v1163_v37, %v1163_v37 }
  0xe8   :  { %v1066_v40 = vpack.c.bf16 %v1195_v39, %v1194_v34  ;;  %v269_v41 = vpop.f32.mrf.mxu0  ;;  %v806_v0 = vmul.f32 %v1195_v39, %v1195_v39 }
  0xe9   :  { %1098 = vst [vmem:[%s1480_s4 + $0x8] sm:$0xff] %v1026_v38   ;;  %v1021_v43 = vpack.c.bf16 %v269_v41, %v266_v35  ;;  %v715_v44 = vadd.f32 %v269_v41, %v266_v35  ;;  %v740_v45 = vmul.f32 %v269_v41, %v269_v41  ;;  %v494_v46 = vpop.f32.mrf.mxu1 }
  0xea   :  { %1105 = vst [vmem:[%s1481_s5 + $0x8] sm:$0xff] %v1066_v40   ;;  %v1061_v48 = vpack.c.bf16 %v494_v46, %v491_v36  ;;  %v779_v49 = vadd.f32 %v494_v46, %v491_v36  ;;  %v804_v50 = vmul.f32 %v494_v46, %v494_v46  ;;  %v1166_v51 = vpop.f32.mrf.mxu0 }
  0xeb   :  { %1022 = vst [vmem:[%s1480_s4] sm:$0xff] %v1021_v43   ;;  %v716_v53 = vadd.f32 %v1162_v33, %v715_v44  ;;  %v755_v54 = vadd.f32 %v740_v45, %v739_v42  ;;  %v1198_v55 = vpop.f32.mrf.mxu1  ;;  %v745_v24 = vmul.f32 %v1166_v51, %v1166_v51 }
  0xec   :  { %1062 = vst [vmem:[%s1481_s5] sm:$0xff] %v1061_v48   ;;  %v780_v57 = vadd.f32 %v1194_v34, %v779_v49  ;;  %v819_v58 = vadd.f32 %v804_v50, %v803_v47  ;;  %v282_v59 = vpop.f32.mrf.mxu0  ;;  %v809_v28 = vmul.f32 %v1198_v55, %v1198_v55 }
  0xed   :  { %v756_v61 = vadd.f32 %v755_v54, %v741_v52  ;;  %v717_v62 = vadd.f32 %v1163_v37, %v716_v53  ;;  %v507_v63 = vpop.f32.mrf.mxu1  ;;  %v743_v5 = vmul.f32 %v282_v59, %v282_v59 }
  0xee   :  { %v820_v1 = vadd.f32 %v819_v58, %v805_v56  ;;  %v781_v2 = vadd.f32 %v1195_v39, %v780_v57  ;;  %v1167_v3 = vpop.f32.mrf.mxu0  ;;  %v807_v10 = vmul.f32 %v507_v63, %v507_v63 }
  0xef   :  { %v718_v4 = vadd.f32 %v717_v62, %v282_v59  ;;  %v757_v6 = vadd.f32 %v756_v61, %v742_v60  ;;  %v1036_v7 = vpack.c.bf16 %v1167_v3, %v1166_v51  ;;  %v1199_v8 = vpop.f32.mrf.mxu1  ;;  %v746_v32 = vmul.f32 %v1167_v3, %v1167_v3 }
  0xf0   :  { %v782_v9 = vadd.f32 %v781_v2, %v507_v63  ;;  %v821_v11 = vadd.f32 %v820_v1, %v806_v0  ;;  %v1076_v12 = vpack.c.bf16 %v1199_v8, %v1198_v55  ;;  %v285_v13 = vpop.f32.mrf.mxu0  ;;  %v810_v36 = vmul.f32 %v1199_v8, %v1199_v8 }
  0xf1   :  { %v758_v14 = vadd.f32 %v757_v6, %v743_v5  ;;  %1100 = vst [vmem:[%s1480_s4 + $0x18] sm:$0xff] %v1036_v7   ;;  %v1031_v15 = vpack.c.bf16 %v285_v13, %v282_v59  ;;  %v719_v16 = vadd.f32 %v718_v4, %v285_v13  ;;  %v744_v17 = vmul.f32 %v285_v13, %v285_v13  ;;  %v510_v18 = vpop.f32.mrf.mxu1 }
  0xf2   :  { %v822_v19 = vadd.f32 %v821_v11, %v807_v10  ;;  %1107 = vst [vmem:[%s1481_s5 + $0x18] sm:$0xff] %v1076_v12   ;;  %v1071_v20 = vpack.c.bf16 %v510_v18, %v507_v63  ;;  %v783_v21 = vadd.f32 %v782_v9, %v510_v18  ;;  %v808_v22 = vmul.f32 %v510_v18, %v510_v18  ;;  %v1170_v23 = vpop.f32.mrf.mxu0 }
  0xf3   :  { %1099 = vst [vmem:[%s1480_s4 + $0x10] sm:$0xff] %v1031_v15   ;;  %v720_v25 = vadd.f32 %v1166_v51, %v719_v16  ;;  %v759_v26 = vadd.f32 %v758_v14, %v744_v17  ;;  %v1202_v27 = vpop.f32.mrf.mxu1  ;;  %v749_v60 = vmul.f32 %v1170_v23, %v1170_v23 }
  0xf4   :  { %1106 = vst [vmem:[%s1481_s5 + $0x10] sm:$0xff] %v1071_v20   ;;  %v784_v29 = vadd.f32 %v1198_v55, %v783_v21  ;;  %v823_v30 = vadd.f32 %v822_v19, %v808_v22  ;;  %v298_v31 = vpop.f32.mrf.mxu0  ;;  %v813_v0 = vmul.f32 %v1202_v27, %v1202_v27 }
  0xf5   :  { %v760_v33 = vadd.f32 %v759_v26, %v745_v24  ;;  %v721_v34 = vadd.f32 %v1167_v3, %v720_v25  ;;  %v523_v35 = vpop.f32.mrf.mxu1  ;;  %v747_v41 = vmul.f32 %v298_v31, %v298_v31 }
  0xf6   :  { %v824_v37 = vadd.f32 %v823_v30, %v809_v28  ;;  %v785_v38 = vadd.f32 %v1199_v8, %v784_v29  ;;  %v1171_v39 = vpop.f32.mrf.mxu0  ;;  %v811_v46 = vmul.f32 %v523_v35, %v523_v35 }
  0xf7   :  { %v722_v40 = vadd.f32 %v721_v34, %v298_v31  ;;  %v761_v42 = vadd.f32 %v760_v33, %v746_v32  ;;  %v1046_v43 = vpack.c.bf16 %v1171_v39, %v1170_v23  ;;  %v1203_v44 = vpop.f32.mrf.mxu1  ;;  %v750_v4 = vmul.f32 %v1171_v39, %v1171_v39 }
  0xf8   :  { %v786_v45 = vadd.f32 %v785_v38, %v523_v35  ;;  %v825_v47 = vadd.f32 %v824_v37, %v810_v36  ;;  %v1086_v48 = vpack.c.bf16 %v1203_v44, %v1202_v27  ;;  %v301_v49 = vpop.f32.mrf.mxu0  ;;  %v814_v8 = vmul.f32 %v1203_v44, %v1203_v44 }
  0xf9   :  { %v762_v50 = vadd.f32 %v761_v42, %v747_v41  ;;  %1102 = vst [vmem:[%s1480_s4 + $0x28] sm:$0xff] %v1046_v43   ;;  %v1041_v51 = vpack.c.bf16 %v301_v49, %v298_v31  ;;  %v723_v52 = vadd.f32 %v722_v40, %v301_v49  ;;  %v748_v53 = vmul.f32 %v301_v49, %v301_v49  ;;  %v526_v54 = vpop.f32.mrf.mxu1 }
  0xfa   :  { %v826_v55 = vadd.f32 %v825_v47, %v811_v46  ;;  %1109 = vst [vmem:[%s1481_s5 + $0x28] sm:$0xff] %v1086_v48   ;;  %v1081_v56 = vpack.c.bf16 %v526_v54, %v523_v35  ;;  %v787_v57 = vadd.f32 %v786_v45, %v526_v54  ;;  %v812_v58 = vmul.f32 %v526_v54, %v526_v54  ;;  %v1174_v59 = vpop.f32.mrf.mxu0 }
  0xfb   :  { %1101 = vst [vmem:[%s1480_s4 + $0x20] sm:$0xff] %v1041_v51   ;;  %v724_v61 = vadd.f32 %v1170_v23, %v723_v52  ;;  %v763_v62 = vadd.f32 %v762_v50, %v748_v53  ;;  %v1206_v63 = vpop.f32.mrf.mxu1  ;;  %v753_v31 = vmul.f32 %v1174_v59, %v1174_v59 }
  0xfc   :  { %1108 = vst [vmem:[%s1481_s5 + $0x20] sm:$0xff] %v1081_v56   ;;  %v788_v1 = vadd.f32 %v1202_v27, %v787_v57  ;;  %v827_v2 = vadd.f32 %v826_v55, %v812_v58  ;;  %v314_v3 = vpop.f32.mrf.mxu0  ;;  %v817_v34 = vmul.f32 %v1206_v63, %v1206_v63 }
  0xfd   :  { %v764_v5 = vadd.f32 %v763_v62, %v749_v60  ;;  %v725_v6 = vadd.f32 %v1171_v39, %v724_v61  ;;  %v539_v7 = vpop.f32.mrf.mxu1  ;;  %v751_v13 = vmul.f32 %v314_v3, %v314_v3  ;;  %v714_v61 = vld [vmem:[%s1476_s6] sm:$0x1] }
  0xfe   :  { %v828_v9 = vadd.f32 %v827_v2, %v813_v0  ;;  %v789_v10 = vadd.f32 %v1203_v44, %v788_v1  ;;  %v1175_v11 = vpop.f32.mrf.mxu0  ;;  %v815_v18 = vmul.f32 %v539_v7, %v539_v7  ;;  %v778_v2 = vld [vmem:[%s1478_s8] sm:$0x1] }
  0xff   :  { %v726_v12 = vadd.f32 %v725_v6, %v314_v3  ;;  %v765_v14 = vadd.f32 %v764_v5, %v750_v4  ;;  %v1056_v15 = vpack.c.bf16 %v1175_v11, %v1174_v59  ;;  %v1207_v16 = vpop.f32.mrf.mxu1  ;;  %v754_v37 = vmul.f32 %v1175_v11, %v1175_v11 }
 0x100   :  { %v790_v17 = vadd.f32 %v789_v10, %v539_v7  ;;  %v829_v19 = vadd.f32 %v828_v9, %v814_v8  ;;  %v1096_v20 = vpack.c.bf16 %v1207_v16, %v1206_v63  ;;  %v317_v21 = vpop.f32.mrf.mxu0  ;;  %v818_v40 = vmul.f32 %v1207_v16, %v1207_v16  ;;  %v802_v8 = vld [vmem:[%s1479_s9] sm:$0x1] }
 0x101   :  { %v766_v22 = vadd.f32 %v765_v14, %v751_v13  ;;  %1104 = vst [vmem:[%s1480_s4 + $0x38] sm:$0xff] %v1056_v15   ;;  %v1051_v23 = vpack.c.bf16 %v317_v21, %v314_v3  ;;  %v727_v24 = vadd.f32 %v726_v12, %v317_v21  ;;  %v752_v25 = vmul.f32 %v317_v21, %v317_v21  ;;  %v542_v26 = vpop.f32.mrf.mxu1  ;;  %v738_v3 = vld [vmem:[%s1477_s7] sm:$0x1] }
 0x102   :  { %v830_v27 = vadd.f32 %v829_v19, %v815_v18  ;;  %1111 = vst [vmem:[%s1481_s5 + $0x38] sm:$0xff] %v1096_v20   ;;  %v1091_v28 = vpack.c.bf16 %v542_v26, %v539_v7  ;;  %v791_v29 = vadd.f32 %v790_v17, %v542_v26  ;;  %v816_v30 = vmul.f32 %v542_v26, %v542_v26 }
 0x103   :  { %1103 = vst [vmem:[%s1480_s4 + $0x30] sm:$0xff] %v1051_v23   ;;  %v728_v32 = vadd.f32 %v1174_v59, %v727_v24  ;;  %v767_v33 = vadd.f32 %v766_v22, %v752_v25 }
 0x104   :  { %1110 = vst [vmem:[%s1481_s5 + $0x30] sm:$0xff] %v1091_v28   ;;  %v792_v35 = vadd.f32 %v1206_v63, %v791_v29  ;;  %v831_v36 = vadd.f32 %v830_v27, %v816_v30 }
 0x105   :  { %v729_v38 = vadd.f32 %v1175_v11, %v728_v32  ;;  %v768_v39 = vadd.f32 %v767_v33, %v753_v31 }
 0x106   :  { %v793_v41 = vadd.f32 %v1207_v16, %v792_v35  ;;  %v832_v42 = vadd.f32 %v831_v36, %v817_v34 }
 0x107   :  { %v730_v43 = vrot.slane %v729_v38, 4  ;;  %v769_v44 = vadd.f32 %v768_v39, %v754_v37 }
 0x108   :  { %v794_v45 = vrot.slane %v793_v41, 4  ;;  %v833_v46 = vadd.f32 %v832_v42, %v818_v40 }
 0x109   :  { %v731_v47 = vadd.f32 %v730_v43, %v729_v38  ;;  %v770_v48 = vrot.slane %v769_v44, 4 }
 0x10a   :  { %v795_v49 = vadd.f32 %v794_v45, %v793_v41  ;;  %v834_v50 = vrot.slane %v833_v46, 4 }
 0x10b   :  { %v732_v51 = vrot.slane %v731_v47, 2  ;;  %v771_v52 = vadd.f32 %v770_v48, %v769_v44 }
 0x10c   :  { %v796_v53 = vrot.slane %v795_v49, 2  ;;  %v835_v54 = vadd.f32 %v834_v50, %v833_v46 }
 0x10d   :  { %v733_v55 = vadd.f32 %v732_v51, %v731_v47  ;;  %v772_v56 = vrot.slane %v771_v52, 2 }
 0x10e   :  { %v797_v57 = vadd.f32 %v796_v53, %v795_v49  ;;  %v836_v58 = vrot.slane %v835_v54, 2 }
 0x10f   :  { %v734_v59 = vrot.slane %v733_v55, 1  ;;  %v773_v60 = vadd.f32 %v772_v56, %v771_v52 }
 0x110   :  { %v798_v62 = vrot.slane %v797_v57, 1  ;;  %v837_v63 = vadd.f32 %v836_v58, %v835_v54 }
 0x111   :  { %v735_v0 = vadd.f32 %v734_v59, %v733_v55  ;;  %v774_v1 = vrot.slane %v773_v60, 1 }
 0x112   :  { %v799_v4 = vadd.f32 %v798_v62, %v797_v57  ;;  %v838_v5 = vrot.slane %v837_v63, 1 }
 0x113   :  { %v736_v6 = vadd.f32 %v735_v0, %v714_v61  ;;  %v775_v7 = vadd.f32 %v774_v1, %v773_v60 }
 0x114   :  { %v800_v9 = vadd.f32 %v799_v4, %v778_v2  ;;  %v839_v10 = vadd.f32 %v838_v5, %v837_v63 }
 0x115   :  { %737 = vst [vmem:[%s1476_s6] sm:$0x1] %v736_v6  ;;  %v776_v11 = vadd.f32 %v775_v7, %v738_v3 }
 0x116   :  { %801 = vst [vmem:[%s1478_s8] sm:$0x1] %v800_v9  ;;  %v840_v12 = vadd.f32 %v839_v10, %v802_v8 }
 0x117   :  { %777 = vst [vmem:[%s1477_s7] sm:$0x1] %v776_v11 }
 0x118   :  { %841 = vst [vmem:[%s1479_s9] sm:$0x1] %v840_v12 }

</bundles_post_ra>
